<compile_context>
chip_gen: v7x
topology: tpu7x:2x2x1
jax: 0.10.0
libtpu: 0.0.40
codegen_flags: <defaults>
</compile_context>

<pallas_src>
import jax
import jax.numpy as jnp
from jax import lax
from jax.experimental import pallas as pl
from jax.experimental.pallas import tpu as pltpu


# --------------------------- fused forward kernel ----------------------------
def _fused_attn_decoder_kernel(
    x_ref,      # (ts, b, in)   inputs, time-major
    h0_ref,     # (1, b, h)     initial hidden
    enc_ref,    # (b, is, h)    encoder outputs, batch-major
    wih_ref,    # (in, 3h)      GRU input weights, gates stacked r|z|n
    whh_ref,    # (h, 3h)       GRU hidden weights, gates stacked r|z|n
    bx_ref,     # (1, 3h)       b_ih(all gates) + [b_hr | b_hz | 0] (pre-folded)
    bhn_ref,    # (1, h)        b_hn (must stay inside r * (...))
    w1_ref,     # (h, h)        concat-Linear, rnn half (transposed)
    w2_ref,     # (h, h)        concat-Linear, ctx half (transposed)
    bc_ref,     # (1, h)
    wo_ref,     # (h, o)        out-Linear (transposed)
    bo_ref,     # (1, o)
    out_ref,    # (b*ts, o)     final output, flat batch-major
    hn_ref,     # (1, b, h)     final hidden
    attn_ref,   # (b*ts, is)    attention weights, flat batch-major
    gx_scr,     # VMEM (ts, b, 3h)  hoisted input projection, time-major
    rnn_scr,    # VMEM (ts, b, h)   decoder rnn outputs, time-major
    oc_scr,     # VMEM (b*ts, h)    tanh(concat(...)) outputs, batch-major
):
    ts, b, hs = rnn_scr.shape

    # ---- phase 1: input projection for all timesteps (off the serial chain) --
    wih = wih_ref[...]
    bx_b = jnp.broadcast_to(bx_ref[...], (b, 3 * hs))   # hoisted broadcast
    for t in range(ts):                                  # static, tiny
        gx_scr[t] = (
            jnp.dot(x_ref[t], wih, preferred_element_type=jnp.float32) + bx_b
        )

    # ---- phase 2: sequential GRU recurrence (only h @ W_hh inside) ----------
    whh = whh_ref[...]                                   # hoisted weight load
    bhn_b = jnp.broadcast_to(bhn_ref[...], (b, hs))      # hoisted broadcast

    def step(t, h_prev):
        gx = gx_scr[t]                                                 # (b, 3h)
        gh = jnp.dot(h_prev, whh, preferred_element_type=jnp.float32)  # (b, 3h)
        r = jax.nn.sigmoid(gx[:, :hs] + gh[:, :hs])
        z = jax.nn.sigmoid(gx[:, hs:2 * hs] + gh[:, hs:2 * hs])
        n = jnp.tanh(gx[:, 2 * hs:] + r * (gh[:, 2 * hs:] + bhn_b))
        h_new = (1.0 - z) * n + z * h_prev
        rnn_scr[t] = h_new                     # one aligned per-step store
        return h_new

    h_last = lax.fori_loop(0, ts, step, h0_ref[0], unroll=True)
    hn_ref[0] = h_last

    # ---- phase 3: dot-attention + context + concat/out linears --------------
    # Rearrange time-major rnn outputs to one batch-major (b*ts, h) slab once.
    rnn_tm = rnn_scr[...]                                            # (ts, b, h)
    rnn_bm = jnp.concatenate([rnn_tm[:, bj, :] for bj in range(b)],
                             axis=0)                                 # (b*ts, h)

    w2 = w2_ref[...]
    # Hoisted: rnn @ W1 (+ concat bias) over the full slab (one MXU op).
    rnn_w1 = (jnp.dot(rnn_bm, w1_ref[...], preferred_element_type=jnp.float32)
              + bc_ref[...])                                         # (b*ts, h)

    for bj in range(b):                                   # b is tiny & static
        rnn_b = rnn_bm[bj * ts:(bj + 1) * ts]             # (ts, h)
        enc_b = enc_ref[bj]                               # (is, h)
        # 'dot' score: scores[t, s] = <rnn_t, enc_s>
        scores = lax.dot_general(
            rnn_b, enc_b, (((1,), (1,)), ((), ())),
            preferred_element_type=jnp.float32)           # (ts, is)
        m = jnp.max(scores, axis=-1, keepdims=True)
        e = jnp.exp(scores - m)
        denom = jnp.sum(e, axis=-1, keepdims=True)
        w_att = e / denom                                 # exact softmax
        attn_ref[pl.ds(bj * ts, ts)] = w_att

        ctx = jnp.dot(w_att, enc_b, preferred_element_type=jnp.float32)  # (ts, h)
        oc_scr[pl.ds(bj * ts, ts)] = jnp.tanh(
            rnn_w1[bj * ts:(bj + 1) * ts]
            + jnp.dot(ctx, w2, preferred_element_type=jnp.float32))

    # One matmul + one contiguous lane-dense store for the whole output.
    out_ref[...] = (
        jnp.dot(oc_scr[...], wo_ref[...], preferred_element_type=jnp.float32)
        + bo_ref[...]
    )


# ------------------------------ wrapper --------------------------------------
def attn_decoder_forward(params, input_seqs, last_hidden, encoder_outputs):
    """Mirror of AttnDecoderRNN.forward (score_method='dot', n_layers=1)."""
    ts, b, inp = input_seqs.shape
    is_, _, hs = encoder_outputs.shape
    o = params["w_out"].shape[-1]

    enc_bt = jnp.transpose(encoder_outputs, (1, 0, 2))   # tiny input transpose

    grid_spec = pltpu.PrefetchScalarGridSpec(
        num_scalar_prefetch=0,
        grid=(1,),
        in_specs=[
            pl.BlockSpec((ts, b, inp),    lambda i: (0, 0, 0)),
            pl.BlockSpec((1, b, hs),      lambda i: (0, 0, 0)),
            pl.BlockSpec((b, is_, hs),    lambda i: (0, 0, 0)),
            pl.BlockSpec((inp, 3 * hs),   lambda i: (0, 0)),
            pl.BlockSpec((hs, 3 * hs),    lambda i: (0, 0)),
            pl.BlockSpec((1, 3 * hs),     lambda i: (0, 0)),
            pl.BlockSpec((1, hs),         lambda i: (0, 0)),
            pl.BlockSpec((hs, hs),        lambda i: (0, 0)),
            pl.BlockSpec((hs, hs),        lambda i: (0, 0)),
            pl.BlockSpec((1, hs),         lambda i: (0, 0)),
            pl.BlockSpec((hs, o),         lambda i: (0, 0)),
            pl.BlockSpec((1, o),          lambda i: (0, 0)),
        ],
        out_specs=[
            pl.BlockSpec((b * ts, o),     lambda i: (0, 0)),
            pl.BlockSpec((1, b, hs),      lambda i: (0, 0, 0)),
            pl.BlockSpec((b * ts, is_),   lambda i: (0, 0)),
        ],
        scratch_shapes=[
            pltpu.VMEM((ts, b, 3 * hs), jnp.float32),
            pltpu.VMEM((ts, b, hs), jnp.float32),
            pltpu.VMEM((b * ts, hs), jnp.float32),
        ],
    )
    out_flat, hidden, attn_flat = pl.pallas_call(
        _fused_attn_decoder_kernel,
        out_shape=(
            jax.ShapeDtypeStruct((b * ts, o), jnp.float32),
            jax.ShapeDtypeStruct((1, b, hs), jnp.float32),
            jax.ShapeDtypeStruct((b * ts, is_), jnp.float32),
        ),
        grid_spec=grid_spec,
        compiler_params=pltpu.CompilerParams(
            dimension_semantics=("arbitrary",)),
    )(input_seqs, last_hidden, enc_bt,
      params["wih3"], params["whh3"], params["bias_x"], params["b_hn"],
      params["w_concat_rnn"], params["w_concat_ctx"], params["b_concat"],
      params["w_out"], params["b_out"])

    # Batch-major kernel outputs -> module layouts (tiny XLA reshape/transpose).
    output = jnp.transpose(out_flat.reshape(b, ts, o), (1, 0, 2))   # (ts, b, o)
    attn_weights = attn_flat.reshape(b, ts, is_)                    # free reshape
    return output, hidden, attn_weights


def pack_params(p):
    """Stack GRU gate weights to (*, 3h) and pre-fold the r/z biases."""
    wih3 = jnp.concatenate([p["wih"][0], p["wih"][1], p["wih"][2]], axis=1)
    whh3 = jnp.concatenate([p["whh"][0], p["whh"][1], p["whh"][2]], axis=1)
    bias_x = jnp.concatenate(
        [p["bih"][0] + p["bhh"][0], p["bih"][1] + p["bhh"][1], p["bih"][2]],
        axis=1)                                   # (1, 3h)
    b_hn = p["bhh"][2]                            # (1, h)
    packed = dict(p)
    packed.update(wih3=wih3, whh3=whh3, bias_x=bias_x, b_hn=b_hn)
    return packed


# ------------------------------ reference ------------------------------------
def reference_forward(params, x, h0, enc):
    ts = x.shape[0]
    h = h0[0]
    outs = []
    for t in range(ts):
        xt = x[t]
        r = jax.nn.sigmoid(xt @ params["wih"][0] + params["bih"][0][0]
                           + h @ params["whh"][0] + params["bhh"][0][0])
        z = jax.nn.sigmoid(xt @ params["wih"][1] + params["bih"][1][0]
                           + h @ params["whh"][1] + params["bhh"][1][0])
        n = jnp.tanh(xt @ params["wih"][2] + params["bih"][2][0]
                     + r * (h @ params["whh"][2] + params["bhh"][2][0]))
        h = (1.0 - z) * n + z * h
        outs.append(h)
    rnn_out = jnp.stack(outs)                              # [ts, b, h]
    rnn_bt = rnn_out.transpose(1, 0, 2)
    enc_bt = enc.transpose(1, 0, 2)
    scores = jnp.einsum("bth,bsh->bts", rnn_bt, enc_bt)
    w = jax.nn.softmax(scores, axis=-1)
    ctx = jnp.einsum("bts,bsh->bth", w, enc_bt)
    oc = jnp.tanh(rnn_bt @ params["w_concat_rnn"] + ctx @ params["w_concat_ctx"]
                  + params["b_concat"])
    out = oc @ params["w_out"] + params["b_out"]           # [b, ts, o]
    return out.transpose(1, 0, 2), h[None], w


if __name__ == "__main__":
    # Small shapes consistent with the module's forward signature.
    ts, is_, b = 8, 10, 2
    input_size = hidden_size = 32
    output_size = 16
    n_layers = 1

    key = jax.random.PRNGKey(0)
    ks = jax.random.split(key, 12)
    scale = 1.0 / jnp.sqrt(hidden_size)

    raw_params = {
        # GRU weights (gate order r, z, n), pre-transposed for x @ W.
        "wih": jax.random.uniform(ks[0], (3, input_size, hidden_size),
                                  jnp.float32, -scale, scale),
        "whh": jax.random.uniform(ks[1], (3, hidden_size, hidden_size),
                                  jnp.float32, -scale, scale),
        "bih": jax.random.uniform(ks[2], (3, 1, hidden_size),
                                  jnp.float32, -scale, scale),
        "bhh": jax.random.uniform(ks[3], (3, 1, hidden_size),
                                  jnp.float32, -scale, scale),
        # concat: Linear(2h, h) split into rnn- and context- halves (transposed).
        "w_concat_rnn": jax.random.uniform(ks[4], (hidden_size, hidden_size),
                                           jnp.float32, -scale, scale),
        "w_concat_ctx": jax.random.uniform(ks[5], (hidden_size, hidden_size),
                                           jnp.float32, -scale, scale),
        "b_concat": jax.random.uniform(ks[6], (1, hidden_size),
                                       jnp.float32, -scale, scale),
        # out: Linear(h, o) (transposed).
        "w_out": jax.random.uniform(ks[7], (hidden_size, output_size),
                                    jnp.float32, -scale, scale),
        "b_out": jax.random.uniform(ks[8], (1, output_size),
                                    jnp.float32, -scale, scale),
    }
    params = pack_params(raw_params)

    input_seqs = jax.random.normal(ks[9], (ts, b, input_size), jnp.float32)
    last_hidden = jax.random.normal(ks[10], (n_layers, b, hidden_size), jnp.float32)
    encoder_outputs = jax.random.normal(ks[11], (is_, b, hidden_size), jnp.float32)

    fwd = jax.jit(attn_decoder_forward)
    output, hidden, attn_weights = fwd(params, input_seqs, last_hidden,
                                       encoder_outputs)
    jax.block_until_ready((output, hidden, attn_weights))

    # Sanity-check against a pure-JAX reference (exact softmax reciprocal now;
    # remaining differences are transcendental/matmul rounding only).
    ref_out, ref_hidden, ref_attn = reference_forward(
        raw_params, input_seqs, last_hidden, encoder_outputs)
    assert output.shape == (ts, b, output_size)
    assert hidden.shape == (n_layers, b, hidden_size)
    assert attn_weights.shape == (b, ts, is_)
    assert jnp.allclose(output, ref_out, atol=1e-3, rtol=1e-3)
    assert jnp.allclose(hidden, ref_hidden, atol=1e-3, rtol=1e-3)
    assert jnp.allclose(attn_weights, ref_attn, atol=1e-3, rtol=1e-3)

    # TODO(synk): GRU dropout (dropout_p) is a no-op for n_layers=1 and the
    # module's internal time.time() instrumentation has no kernel equivalent.
    print("KERNEL_OK")
</pallas_src>

<mosaic_0001>
module attributes {stable_mosaic.version = 11 : i64} {
  func.func @_fused_attn_decoder_kernel(%arg0: i32, %arg1: memref<8x2x32xf32, #tpu.memory_space<vmem>>, %arg2: memref<1x2x32xf32, #tpu.memory_space<vmem>>, %arg3: memref<2x10x32xf32, #tpu.memory_space<vmem>>, %arg4: memref<32x96xf32, #tpu.memory_space<vmem>>, %arg5: memref<32x96xf32, #tpu.memory_space<vmem>>, %arg6: memref<1x96xf32, #tpu.memory_space<vmem>>, %arg7: memref<1x32xf32, #tpu.memory_space<vmem>>, %arg8: memref<32x32xf32, #tpu.memory_space<vmem>>, %arg9: memref<32x32xf32, #tpu.memory_space<vmem>>, %arg10: memref<1x32xf32, #tpu.memory_space<vmem>>, %arg11: memref<32x16xf32, #tpu.memory_space<vmem>>, %arg12: memref<1x16xf32, #tpu.memory_space<vmem>>, %arg13: memref<16x16xf32, #tpu.memory_space<vmem>>, %arg14: memref<1x2x32xf32, #tpu.memory_space<vmem>>, %arg15: memref<16x10xf32, #tpu.memory_space<vmem>>, %arg16: memref<8x2x96xf32, #tpu.memory_space<vmem>>, %arg17: memref<8x2x32xf32, #tpu.memory_space<vmem>>, %arg18: memref<16x32xf32, #tpu.memory_space<vmem>>) attributes {dimension_semantics = [#tpu.dimension_semantics<arbitrary>], iteration_bounds = array<i64: 1>, scalar_prefetch = 0 : i64, scratch_operands = 3 : i64, tpu.core_type = #tpu.core_type<tc>, window_params = [{pipeline_mode = #tpu.pipeline_mode<synchronous>, transform_indices = @transform_0, window_bounds = array<i64: 8, 2, 32>}, {pipeline_mode = #tpu.pipeline_mode<synchronous>, transform_indices = @transform_1, window_bounds = array<i64: 1, 2, 32>}, {pipeline_mode = #tpu.pipeline_mode<synchronous>, transform_indices = @transform_2, window_bounds = array<i64: 2, 10, 32>}, {pipeline_mode = #tpu.pipeline_mode<synchronous>, transform_indices = @transform_3, window_bounds = array<i64: 32, 96>}, {pipeline_mode = #tpu.pipeline_mode<synchronous>, transform_indices = @transform_4, window_bounds = array<i64: 32, 96>}, {pipeline_mode = #tpu.pipeline_mode<synchronous>, transform_indices = @transform_5, window_bounds = array<i64: 1, 96>}, {pipeline_mode = #tpu.pipeline_mode<synchronous>, transform_indices = @transform_6, window_bounds = array<i64: 1, 32>}, {pipeline_mode = #tpu.pipeline_mode<synchronous>, transform_indices = @transform_7, window_bounds = array<i64: 32, 32>}, {pipeline_mode = #tpu.pipeline_mode<synchronous>, transform_indices = @transform_8, window_bounds = array<i64: 32, 32>}, {pipeline_mode = #tpu.pipeline_mode<synchronous>, transform_indices = @transform_9, window_bounds = array<i64: 1, 32>}, {pipeline_mode = #tpu.pipeline_mode<synchronous>, transform_indices = @transform_10, window_bounds = array<i64: 32, 16>}, {pipeline_mode = #tpu.pipeline_mode<synchronous>, transform_indices = @transform_11, window_bounds = array<i64: 1, 16>}, {pipeline_mode = #tpu.pipeline_mode<synchronous>, transform_indices = @transform_12, window_bounds = array<i64: 16, 16>}, {pipeline_mode = #tpu.pipeline_mode<synchronous>, transform_indices = @transform_13, window_bounds = array<i64: 1, 2, 32>}, {pipeline_mode = #tpu.pipeline_mode<synchronous>, transform_indices = @transform_14, window_bounds = array<i64: 16, 10>}]} {
    %c0 = arith.constant 0 : index
    %c0_0 = arith.constant 0 : index
    %0 = vector.load %arg4[%c0, %c0_0] : memref<32x96xf32, #tpu.memory_space<vmem>>, vector<32x96xf32>
    %c0_1 = arith.constant 0 : index
    %c0_2 = arith.constant 0 : index
    %1 = vector.load %arg6[%c0_1, %c0_2] : memref<1x96xf32, #tpu.memory_space<vmem>>, vector<1x96xf32>
    %2 = vector.shape_cast %1 : vector<1x96xf32> to vector<1x96xf32>
    %3 = vector.broadcast %2 : vector<1x96xf32> to vector<2x96xf32>
    %c0_3 = arith.constant 0 : index
    %c0_4 = arith.constant 0 : index
    %c0_5 = arith.constant 0 : index
    %4 = vector.load %arg1[%c0_3, %c0_4, %c0_5] : memref<8x2x32xf32, #tpu.memory_space<vmem>>, vector<1x2x32xf32>
    %5 = vector.shape_cast %4 : vector<1x2x32xf32> to vector<2x32xf32>
    %cst = arith.constant dense<0.000000e+00> : vector<2x96xf32>
    %6 = tpu.matmul %5, %0, %cst {dimension_numbers = #tpu.dot_dimension_numbers<[1], [0], [0], [1], [0, 0, 1, 1], [], []>} : vector<2x32xf32>, vector<32x96xf32>, vector<2x96xf32> -> vector<2x96xf32>
    %7 = arith.addf %6, %3 : vector<2x96xf32>
    %c0_6 = arith.constant 0 : index
    %c0_7 = arith.constant 0 : index
    %c0_8 = arith.constant 0 : index
    %8 = vector.load %arg16[%c0_6, %c0_7, %c0_8] : memref<8x2x96xf32, #tpu.memory_space<vmem>>, vector<1x2x96xf32>
    %9 = vector.shape_cast %8 : vector<1x2x96xf32> to vector<2x96xf32>
    %10 = vector.shape_cast %7 : vector<2x96xf32> to vector<1x2x96xf32>
    tpu.vector_store %arg16[%c0_6, %c0_7, %c0_8], %10 {strides = array<i32>} : memref<8x2x96xf32, #tpu.memory_space<vmem>>, vector<1x2x96xf32>,
    %c1 = arith.constant 1 : index
    %c0_9 = arith.constant 0 : index
    %c0_10 = arith.constant 0 : index
    %11 = vector.load %arg1[%c1, %c0_9, %c0_10] : memref<8x2x32xf32, #tpu.memory_space<vmem>>, vector<1x2x32xf32>
    %12 = vector.shape_cast %11 : vector<1x2x32xf32> to vector<2x32xf32>
    %cst_11 = arith.constant dense<0.000000e+00> : vector<2x96xf32>
    %13 = tpu.matmul %12, %0, %cst_11 {dimension_numbers = #tpu.dot_dimension_numbers<[1], [0], [0], [1], [0, 0, 1, 1], [], []>} : vector<2x32xf32>, vector<32x96xf32>, vector<2x96xf32> -> vector<2x96xf32>
    %14 = arith.addf %13, %3 : vector<2x96xf32>
    %c1_12 = arith.constant 1 : index
    %c0_13 = arith.constant 0 : index
    %c0_14 = arith.constant 0 : index
    %15 = vector.load %arg16[%c1_12, %c0_13, %c0_14] : memref<8x2x96xf32, #tpu.memory_space<vmem>>, vector<1x2x96xf32>
    %16 = vector.shape_cast %15 : vector<1x2x96xf32> to vector<2x96xf32>
    %17 = vector.shape_cast %14 : vector<2x96xf32> to vector<1x2x96xf32>
    tpu.vector_store %arg16[%c1_12, %c0_13, %c0_14], %17 {strides = array<i32>} : memref<8x2x96xf32, #tpu.memory_space<vmem>>, vector<1x2x96xf32>,
    %c2 = arith.constant 2 : index
    %c0_15 = arith.constant 0 : index
    %c0_16 = arith.constant 0 : index
    %18 = vector.load %arg1[%c2, %c0_15, %c0_16] : memref<8x2x32xf32, #tpu.memory_space<vmem>>, vector<1x2x32xf32>
    %19 = vector.shape_cast %18 : vector<1x2x32xf32> to vector<2x32xf32>
    %cst_17 = arith.constant dense<0.000000e+00> : vector<2x96xf32>
    %20 = tpu.matmul %19, %0, %cst_17 {dimension_numbers = #tpu.dot_dimension_numbers<[1], [0], [0], [1], [0, 0, 1, 1], [], []>} : vector<2x32xf32>, vector<32x96xf32>, vector<2x96xf32> -> vector<2x96xf32>
    %21 = arith.addf %20, %3 : vector<2x96xf32>
    %c2_18 = arith.constant 2 : index
    %c0_19 = arith.constant 0 : index
    %c0_20 = arith.constant 0 : index
    %22 = vector.load %arg16[%c2_18, %c0_19, %c0_20] : memref<8x2x96xf32, #tpu.memory_space<vmem>>, vector<1x2x96xf32>
    %23 = vector.shape_cast %22 : vector<1x2x96xf32> to vector<2x96xf32>
    %24 = vector.shape_cast %21 : vector<2x96xf32> to vector<1x2x96xf32>
    tpu.vector_store %arg16[%c2_18, %c0_19, %c0_20], %24 {strides = array<i32>} : memref<8x2x96xf32, #tpu.memory_space<vmem>>, vector<1x2x96xf32>,
    %c3 = arith.constant 3 : index
    %c0_21 = arith.constant 0 : index
    %c0_22 = arith.constant 0 : index
    %25 = vector.load %arg1[%c3, %c0_21, %c0_22] : memref<8x2x32xf32, #tpu.memory_space<vmem>>, vector<1x2x32xf32>
    %26 = vector.shape_cast %25 : vector<1x2x32xf32> to vector<2x32xf32>
    %cst_23 = arith.constant dense<0.000000e+00> : vector<2x96xf32>
    %27 = tpu.matmul %26, %0, %cst_23 {dimension_numbers = #tpu.dot_dimension_numbers<[1], [0], [0], [1], [0, 0, 1, 1], [], []>} : vector<2x32xf32>, vector<32x96xf32>, vector<2x96xf32> -> vector<2x96xf32>
    %28 = arith.addf %27, %3 : vector<2x96xf32>
    %c3_24 = arith.constant 3 : index
    %c0_25 = arith.constant 0 : index
    %c0_26 = arith.constant 0 : index
    %29 = vector.load %arg16[%c3_24, %c0_25, %c0_26] : memref<8x2x96xf32, #tpu.memory_space<vmem>>, vector<1x2x96xf32>
    %30 = vector.shape_cast %29 : vector<1x2x96xf32> to vector<2x96xf32>
    %31 = vector.shape_cast %28 : vector<2x96xf32> to vector<1x2x96xf32>
    tpu.vector_store %arg16[%c3_24, %c0_25, %c0_26], %31 {strides = array<i32>} : memref<8x2x96xf32, #tpu.memory_space<vmem>>, vector<1x2x96xf32>,
    %c4 = arith.constant 4 : index
    %c0_27 = arith.constant 0 : index
    %c0_28 = arith.constant 0 : index
    %32 = vector.load %arg1[%c4, %c0_27, %c0_28] : memref<8x2x32xf32, #tpu.memory_space<vmem>>, vector<1x2x32xf32>
    %33 = vector.shape_cast %32 : vector<1x2x32xf32> to vector<2x32xf32>
    %cst_29 = arith.constant dense<0.000000e+00> : vector<2x96xf32>
    %34 = tpu.matmul %33, %0, %cst_29 {dimension_numbers = #tpu.dot_dimension_numbers<[1], [0], [0], [1], [0, 0, 1, 1], [], []>} : vector<2x32xf32>, vector<32x96xf32>, vector<2x96xf32> -> vector<2x96xf32>
    %35 = arith.addf %34, %3 : vector<2x96xf32>
    %c4_30 = arith.constant 4 : index
    %c0_31 = arith.constant 0 : index
    %c0_32 = arith.constant 0 : index
    %36 = vector.load %arg16[%c4_30, %c0_31, %c0_32] : memref<8x2x96xf32, #tpu.memory_space<vmem>>, vector<1x2x96xf32>
    %37 = vector.shape_cast %36 : vector<1x2x96xf32> to vector<2x96xf32>
    %38 = vector.shape_cast %35 : vector<2x96xf32> to vector<1x2x96xf32>
    tpu.vector_store %arg16[%c4_30, %c0_31, %c0_32], %38 {strides = array<i32>} : memref<8x2x96xf32, #tpu.memory_space<vmem>>, vector<1x2x96xf32>,
    %c5 = arith.constant 5 : index
    %c0_33 = arith.constant 0 : index
    %c0_34 = arith.constant 0 : index
    %39 = vector.load %arg1[%c5, %c0_33, %c0_34] : memref<8x2x32xf32, #tpu.memory_space<vmem>>, vector<1x2x32xf32>
    %40 = vector.shape_cast %39 : vector<1x2x32xf32> to vector<2x32xf32>
    %cst_35 = arith.constant dense<0.000000e+00> : vector<2x96xf32>
    %41 = tpu.matmul %40, %0, %cst_35 {dimension_numbers = #tpu.dot_dimension_numbers<[1], [0], [0], [1], [0, 0, 1, 1], [], []>} : vector<2x32xf32>, vector<32x96xf32>, vector<2x96xf32> -> vector<2x96xf32>
    %42 = arith.addf %41, %3 : vector<2x96xf32>
    %c5_36 = arith.constant 5 : index
    %c0_37 = arith.constant 0 : index
    %c0_38 = arith.constant 0 : index
    %43 = vector.load %arg16[%c5_36, %c0_37, %c0_38] : memref<8x2x96xf32, #tpu.memory_space<vmem>>, vector<1x2x96xf32>
    %44 = vector.shape_cast %43 : vector<1x2x96xf32> to vector<2x96xf32>
    %45 = vector.shape_cast %42 : vector<2x96xf32> to vector<1x2x96xf32>
    tpu.vector_store %arg16[%c5_36, %c0_37, %c0_38], %45 {strides = array<i32>} : memref<8x2x96xf32, #tpu.memory_space<vmem>>, vector<1x2x96xf32>,
    %c6 = arith.constant 6 : index
    %c0_39 = arith.constant 0 : index
    %c0_40 = arith.constant 0 : index
    %46 = vector.load %arg1[%c6, %c0_39, %c0_40] : memref<8x2x32xf32, #tpu.memory_space<vmem>>, vector<1x2x32xf32>
    %47 = vector.shape_cast %46 : vector<1x2x32xf32> to vector<2x32xf32>
    %cst_41 = arith.constant dense<0.000000e+00> : vector<2x96xf32>
    %48 = tpu.matmul %47, %0, %cst_41 {dimension_numbers = #tpu.dot_dimension_numbers<[1], [0], [0], [1], [0, 0, 1, 1], [], []>} : vector<2x32xf32>, vector<32x96xf32>, vector<2x96xf32> -> vector<2x96xf32>
    %49 = arith.addf %48, %3 : vector<2x96xf32>
    %c6_42 = arith.constant 6 : index
    %c0_43 = arith.constant 0 : index
    %c0_44 = arith.constant 0 : index
    %50 = vector.load %arg16[%c6_42, %c0_43, %c0_44] : memref<8x2x96xf32, #tpu.memory_space<vmem>>, vector<1x2x96xf32>
    %51 = vector.shape_cast %50 : vector<1x2x96xf32> to vector<2x96xf32>
    %52 = vector.shape_cast %49 : vector<2x96xf32> to vector<1x2x96xf32>
    tpu.vector_store %arg16[%c6_42, %c0_43, %c0_44], %52 {strides = array<i32>} : memref<8x2x96xf32, #tpu.memory_space<vmem>>, vector<1x2x96xf32>,
    %c7 = arith.constant 7 : index
    %c0_45 = arith.constant 0 : index
    %c0_46 = arith.constant 0 : index
    %53 = vector.load %arg1[%c7, %c0_45, %c0_46] : memref<8x2x32xf32, #tpu.memory_space<vmem>>, vector<1x2x32xf32>
    %54 = vector.shape_cast %53 : vector<1x2x32xf32> to vector<2x32xf32>
    %cst_47 = arith.constant dense<0.000000e+00> : vector<2x96xf32>
    %55 = tpu.matmul %54, %0, %cst_47 {dimension_numbers = #tpu.dot_dimension_numbers<[1], [0], [0], [1], [0, 0, 1, 1], [], []>} : vector<2x32xf32>, vector<32x96xf32>, vector<2x96xf32> -> vector<2x96xf32>
    %56 = arith.addf %55, %3 : vector<2x96xf32>
    %c7_48 = arith.constant 7 : index
    %c0_49 = arith.constant 0 : index
    %c0_50 = arith.constant 0 : index
    %57 = vector.load %arg16[%c7_48, %c0_49, %c0_50] : memref<8x2x96xf32, #tpu.memory_space<vmem>>, vector<1x2x96xf32>
    %58 = vector.shape_cast %57 : vector<1x2x96xf32> to vector<2x96xf32>
    %59 = vector.shape_cast %56 : vector<2x96xf32> to vector<1x2x96xf32>
    tpu.vector_store %arg16[%c7_48, %c0_49, %c0_50], %59 {strides = array<i32>} : memref<8x2x96xf32, #tpu.memory_space<vmem>>, vector<1x2x96xf32>,
    %c0_51 = arith.constant 0 : index
    %c0_52 = arith.constant 0 : index
    %60 = vector.load %arg5[%c0_51, %c0_52] : memref<32x96xf32, #tpu.memory_space<vmem>>, vector<32x96xf32>
    %c0_53 = arith.constant 0 : index
    %c0_54 = arith.constant 0 : index
    %61 = vector.load %arg7[%c0_53, %c0_54] : memref<1x32xf32, #tpu.memory_space<vmem>>, vector<1x32xf32>
    %62 = vector.shape_cast %61 : vector<1x32xf32> to vector<1x32xf32>
    %63 = vector.broadcast %62 : vector<1x32xf32> to vector<2x32xf32>
    %c0_55 = arith.constant 0 : index
    %c0_56 = arith.constant 0 : index
    %c0_57 = arith.constant 0 : index
    %64 = vector.load %arg2[%c0_55, %c0_56, %c0_57] : memref<1x2x32xf32, #tpu.memory_space<vmem>>, vector<1x2x32xf32>
    %65 = vector.shape_cast %64 : vector<1x2x32xf32> to vector<2x32xf32>
    %c0_i32 = arith.constant 0 : i32
    %66 = arith.index_cast %c0_i32 : i32 to index
    %c0_58 = arith.constant 0 : index
    %c0_59 = arith.constant 0 : index
    %67 = vector.load %arg16[%66, %c0_58, %c0_59] : memref<8x2x96xf32, #tpu.memory_space<vmem>>, vector<1x2x96xf32>
    %68 = vector.shape_cast %67 : vector<1x2x96xf32> to vector<2x96xf32>
    %cst_60 = arith.constant dense<0.000000e+00> : vector<2x96xf32>
    %69 = tpu.matmul %65, %60, %cst_60 {dimension_numbers = #tpu.dot_dimension_numbers<[1], [0], [0], [1], [0, 0, 1, 1], [], []>} : vector<2x32xf32>, vector<32x96xf32>, vector<2x96xf32> -> vector<2x96xf32>
    %70 = vector.extract_strided_slice %68 {offsets = [0, 0], sizes = [2, 32], strides = [1, 1]} : vector<2x96xf32> to vector<2x32xf32>
    %71 = vector.extract_strided_slice %69 {offsets = [0, 0], sizes = [2, 32], strides = [1, 1]} : vector<2x96xf32> to vector<2x32xf32>
    %72 = arith.addf %70, %71 : vector<2x32xf32>
    %73 = arith.negf %72 : vector<2x32xf32>
    %74 = math.exp %73 : vector<2x32xf32>
    %cst_61 = arith.constant 1.000000e+00 : f32
    %75 = vector.broadcast %cst_61 : f32 to vector<2x32xf32>
    %76 = arith.addf %75, %74 : vector<2x32xf32>
    %77 = arith.divf %75, %76 : vector<2x32xf32>
    %78 = vector.extract_strided_slice %68 {offsets = [0, 32], sizes = [2, 32], strides = [1, 1]} : vector<2x96xf32> to vector<2x32xf32>
    %79 = vector.extract_strided_slice %69 {offsets = [0, 32], sizes = [2, 32], strides = [1, 1]} : vector<2x96xf32> to vector<2x32xf32>
    %80 = arith.addf %78, %79 : vector<2x32xf32>
    %81 = arith.negf %80 : vector<2x32xf32>
    %82 = math.exp %81 : vector<2x32xf32>
    %cst_62 = arith.constant 1.000000e+00 : f32
    %83 = vector.broadcast %cst_62 : f32 to vector<2x32xf32>
    %84 = arith.addf %83, %82 : vector<2x32xf32>
    %85 = arith.divf %83, %84 : vector<2x32xf32>
    %86 = vector.extract_strided_slice %68 {offsets = [0, 64], sizes = [2, 32], strides = [1, 1]} : vector<2x96xf32> to vector<2x32xf32>
    %87 = vector.extract_strided_slice %69 {offsets = [0, 64], sizes = [2, 32], strides = [1, 1]} : vector<2x96xf32> to vector<2x32xf32>
    %88 = arith.addf %87, %63 : vector<2x32xf32>
    %89 = arith.mulf %77, %88 : vector<2x32xf32>
    %90 = arith.addf %86, %89 : vector<2x32xf32>
    %91 = math.tanh %90 : vector<2x32xf32>
    %cst_63 = arith.constant 1.000000e+00 : f32
    %92 = vector.broadcast %cst_63 : f32 to vector<2x32xf32>
    %93 = arith.subf %92, %85 : vector<2x32xf32>
    %94 = arith.mulf %93, %91 : vector<2x32xf32>
    %95 = arith.mulf %85, %65 : vector<2x32xf32>
    %96 = arith.addf %94, %95 : vector<2x32xf32>
    %97 = arith.index_cast %c0_i32 : i32 to index
    %c0_64 = arith.constant 0 : index
    %c0_65 = arith.constant 0 : index
    %98 = vector.load %arg17[%97, %c0_64, %c0_65] : memref<8x2x32xf32, #tpu.memory_space<vmem>>, vector<1x2x32xf32>
    %99 = vector.shape_cast %98 : vector<1x2x32xf32> to vector<2x32xf32>
    %100 = vector.shape_cast %96 : vector<2x32xf32> to vector<1x2x32xf32>
    tpu.vector_store %arg17[%97, %c0_64, %c0_65], %100 {strides = array<i32>} : memref<8x2x32xf32, #tpu.memory_space<vmem>>, vector<1x2x32xf32>,
    %c1_i32 = arith.constant 1 : i32
    %101 = arith.index_cast %c1_i32 : i32 to index
    %c0_66 = arith.constant 0 : index
    %c0_67 = arith.constant 0 : index
    %102 = vector.load %arg16[%101, %c0_66, %c0_67] : memref<8x2x96xf32, #tpu.memory_space<vmem>>, vector<1x2x96xf32>
    %103 = vector.shape_cast %102 : vector<1x2x96xf32> to vector<2x96xf32>
    %cst_68 = arith.constant dense<0.000000e+00> : vector<2x96xf32>
    %104 = tpu.matmul %96, %60, %cst_68 {dimension_numbers = #tpu.dot_dimension_numbers<[1], [0], [0], [1], [0, 0, 1, 1], [], []>} : vector<2x32xf32>, vector<32x96xf32>, vector<2x96xf32> -> vector<2x96xf32>
    %105 = vector.extract_strided_slice %103 {offsets = [0, 0], sizes = [2, 32], strides = [1, 1]} : vector<2x96xf32> to vector<2x32xf32>
    %106 = vector.extract_strided_slice %104 {offsets = [0, 0], sizes = [2, 32], strides = [1, 1]} : vector<2x96xf32> to vector<2x32xf32>
    %107 = arith.addf %105, %106 : vector<2x32xf32>
    %108 = arith.negf %107 : vector<2x32xf32>
    %109 = math.exp %108 : vector<2x32xf32>
    %cst_69 = arith.constant 1.000000e+00 : f32
    %110 = vector.broadcast %cst_69 : f32 to vector<2x32xf32>
    %111 = arith.addf %110, %109 : vector<2x32xf32>
    %112 = arith.divf %110, %111 : vector<2x32xf32>
    %113 = vector.extract_strided_slice %103 {offsets = [0, 32], sizes = [2, 32], strides = [1, 1]} : vector<2x96xf32> to vector<2x32xf32>
    %114 = vector.extract_strided_slice %104 {offsets = [0, 32], sizes = [2, 32], strides = [1, 1]} : vector<2x96xf32> to vector<2x32xf32>
    %115 = arith.addf %113, %114 : vector<2x32xf32>
    %116 = arith.negf %115 : vector<2x32xf32>
    %117 = math.exp %116 : vector<2x32xf32>
    %cst_70 = arith.constant 1.000000e+00 : f32
    %118 = vector.broadcast %cst_70 : f32 to vector<2x32xf32>
    %119 = arith.addf %118, %117 : vector<2x32xf32>
    %120 = arith.divf %118, %119 : vector<2x32xf32>
    %121 = vector.extract_strided_slice %103 {offsets = [0, 64], sizes = [2, 32], strides = [1, 1]} : vector<2x96xf32> to vector<2x32xf32>
    %122 = vector.extract_strided_slice %104 {offsets = [0, 64], sizes = [2, 32], strides = [1, 1]} : vector<2x96xf32> to vector<2x32xf32>
    %123 = arith.addf %122, %63 : vector<2x32xf32>
    %124 = arith.mulf %112, %123 : vector<2x32xf32>
    %125 = arith.addf %121, %124 : vector<2x32xf32>
    %126 = math.tanh %125 : vector<2x32xf32>
    %cst_71 = arith.constant 1.000000e+00 : f32
    %127 = vector.broadcast %cst_71 : f32 to vector<2x32xf32>
    %128 = arith.subf %127, %120 : vector<2x32xf32>
    %129 = arith.mulf %128, %126 : vector<2x32xf32>
    %130 = arith.mulf %120, %96 : vector<2x32xf32>
    %131 = arith.addf %129, %130 : vector<2x32xf32>
    %132 = arith.index_cast %c1_i32 : i32 to index
    %c0_72 = arith.constant 0 : index
    %c0_73 = arith.constant 0 : index
    %133 = vector.load %arg17[%132, %c0_72, %c0_73] : memref<8x2x32xf32, #tpu.memory_space<vmem>>, vector<1x2x32xf32>
    %134 = vector.shape_cast %133 : vector<1x2x32xf32> to vector<2x32xf32>
    %135 = vector.shape_cast %131 : vector<2x32xf32> to vector<1x2x32xf32>
    tpu.vector_store %arg17[%132, %c0_72, %c0_73], %135 {strides = array<i32>} : memref<8x2x32xf32, #tpu.memory_space<vmem>>, vector<1x2x32xf32>,
    %c2_i32 = arith.constant 2 : i32
    %136 = arith.index_cast %c2_i32 : i32 to index
    %c0_74 = arith.constant 0 : index
    %c0_75 = arith.constant 0 : index
    %137 = vector.load %arg16[%136, %c0_74, %c0_75] : memref<8x2x96xf32, #tpu.memory_space<vmem>>, vector<1x2x96xf32>
    %138 = vector.shape_cast %137 : vector<1x2x96xf32> to vector<2x96xf32>
    %cst_76 = arith.constant dense<0.000000e+00> : vector<2x96xf32>
    %139 = tpu.matmul %131, %60, %cst_76 {dimension_numbers = #tpu.dot_dimension_numbers<[1], [0], [0], [1], [0, 0, 1, 1], [], []>} : vector<2x32xf32>, vector<32x96xf32>, vector<2x96xf32> -> vector<2x96xf32>
    %140 = vector.extract_strided_slice %138 {offsets = [0, 0], sizes = [2, 32], strides = [1, 1]} : vector<2x96xf32> to vector<2x32xf32>
    %141 = vector.extract_strided_slice %139 {offsets = [0, 0], sizes = [2, 32], strides = [1, 1]} : vector<2x96xf32> to vector<2x32xf32>
    %142 = arith.addf %140, %141 : vector<2x32xf32>
    %143 = arith.negf %142 : vector<2x32xf32>
    %144 = math.exp %143 : vector<2x32xf32>
    %cst_77 = arith.constant 1.000000e+00 : f32
    %145 = vector.broadcast %cst_77 : f32 to vector<2x32xf32>
    %146 = arith.addf %145, %144 : vector<2x32xf32>
    %147 = arith.divf %145, %146 : vector<2x32xf32>
    %148 = vector.extract_strided_slice %138 {offsets = [0, 32], sizes = [2, 32], strides = [1, 1]} : vector<2x96xf32> to vector<2x32xf32>
    %149 = vector.extract_strided_slice %139 {offsets = [0, 32], sizes = [2, 32], strides = [1, 1]} : vector<2x96xf32> to vector<2x32xf32>
    %150 = arith.addf %148, %149 : vector<2x32xf32>
    %151 = arith.negf %150 : vector<2x32xf32>
    %152 = math.exp %151 : vector<2x32xf32>
    %cst_78 = arith.constant 1.000000e+00 : f32
    %153 = vector.broadcast %cst_78 : f32 to vector<2x32xf32>
    %154 = arith.addf %153, %152 : vector<2x32xf32>
    %155 = arith.divf %153, %154 : vector<2x32xf32>
    %156 = vector.extract_strided_slice %138 {offsets = [0, 64], sizes = [2, 32], strides = [1, 1]} : vector<2x96xf32> to vector<2x32xf32>
    %157 = vector.extract_strided_slice %139 {offsets = [0, 64], sizes = [2, 32], strides = [1, 1]} : vector<2x96xf32> to vector<2x32xf32>
    %158 = arith.addf %157, %63 : vector<2x32xf32>
    %159 = arith.mulf %147, %158 : vector<2x32xf32>
    %160 = arith.addf %156, %159 : vector<2x32xf32>
    %161 = math.tanh %160 : vector<2x32xf32>
    %cst_79 = arith.constant 1.000000e+00 : f32
    %162 = vector.broadcast %cst_79 : f32 to vector<2x32xf32>
    %163 = arith.subf %162, %155 : vector<2x32xf32>
    %164 = arith.mulf %163, %161 : vector<2x32xf32>
    %165 = arith.mulf %155, %131 : vector<2x32xf32>
    %166 = arith.addf %164, %165 : vector<2x32xf32>
    %167 = arith.index_cast %c2_i32 : i32 to index
    %c0_80 = arith.constant 0 : index
    %c0_81 = arith.constant 0 : index
    %168 = vector.load %arg17[%167, %c0_80, %c0_81] : memref<8x2x32xf32, #tpu.memory_space<vmem>>, vector<1x2x32xf32>
    %169 = vector.shape_cast %168 : vector<1x2x32xf32> to vector<2x32xf32>
    %170 = vector.shape_cast %166 : vector<2x32xf32> to vector<1x2x32xf32>
    tpu.vector_store %arg17[%167, %c0_80, %c0_81], %170 {strides = array<i32>} : memref<8x2x32xf32, #tpu.memory_space<vmem>>, vector<1x2x32xf32>,
    %c3_i32 = arith.constant 3 : i32
    %171 = arith.index_cast %c3_i32 : i32 to index
    %c0_82 = arith.constant 0 : index
    %c0_83 = arith.constant 0 : index
    %172 = vector.load %arg16[%171, %c0_82, %c0_83] : memref<8x2x96xf32, #tpu.memory_space<vmem>>, vector<1x2x96xf32>
    %173 = vector.shape_cast %172 : vector<1x2x96xf32> to vector<2x96xf32>
    %cst_84 = arith.constant dense<0.000000e+00> : vector<2x96xf32>
    %174 = tpu.matmul %166, %60, %cst_84 {dimension_numbers = #tpu.dot_dimension_numbers<[1], [0], [0], [1], [0, 0, 1, 1], [], []>} : vector<2x32xf32>, vector<32x96xf32>, vector<2x96xf32> -> vector<2x96xf32>
    %175 = vector.extract_strided_slice %173 {offsets = [0, 0], sizes = [2, 32], strides = [1, 1]} : vector<2x96xf32> to vector<2x32xf32>
    %176 = vector.extract_strided_slice %174 {offsets = [0, 0], sizes = [2, 32], strides = [1, 1]} : vector<2x96xf32> to vector<2x32xf32>
    %177 = arith.addf %175, %176 : vector<2x32xf32>
    %178 = arith.negf %177 : vector<2x32xf32>
    %179 = math.exp %178 : vector<2x32xf32>
    %cst_85 = arith.constant 1.000000e+00 : f32
    %180 = vector.broadcast %cst_85 : f32 to vector<2x32xf32>
    %181 = arith.addf %180, %179 : vector<2x32xf32>
    %182 = arith.divf %180, %181 : vector<2x32xf32>
    %183 = vector.extract_strided_slice %173 {offsets = [0, 32], sizes = [2, 32], strides = [1, 1]} : vector<2x96xf32> to vector<2x32xf32>
    %184 = vector.extract_strided_slice %174 {offsets = [0, 32], sizes = [2, 32], strides = [1, 1]} : vector<2x96xf32> to vector<2x32xf32>
    %185 = arith.addf %183, %184 : vector<2x32xf32>
    %186 = arith.negf %185 : vector<2x32xf32>
    %187 = math.exp %186 : vector<2x32xf32>
    %cst_86 = arith.constant 1.000000e+00 : f32
    %188 = vector.broadcast %cst_86 : f32 to vector<2x32xf32>
    %189 = arith.addf %188, %187 : vector<2x32xf32>
    %190 = arith.divf %188, %189 : vector<2x32xf32>
    %191 = vector.extract_strided_slice %173 {offsets = [0, 64], sizes = [2, 32], strides = [1, 1]} : vector<2x96xf32> to vector<2x32xf32>
    %192 = vector.extract_strided_slice %174 {offsets = [0, 64], sizes = [2, 32], strides = [1, 1]} : vector<2x96xf32> to vector<2x32xf32>
    %193 = arith.addf %192, %63 : vector<2x32xf32>
    %194 = arith.mulf %182, %193 : vector<2x32xf32>
    %195 = arith.addf %191, %194 : vector<2x32xf32>
    %196 = math.tanh %195 : vector<2x32xf32>
    %cst_87 = arith.constant 1.000000e+00 : f32
    %197 = vector.broadcast %cst_87 : f32 to vector<2x32xf32>
    %198 = arith.subf %197, %190 : vector<2x32xf32>
    %199 = arith.mulf %198, %196 : vector<2x32xf32>
    %200 = arith.mulf %190, %166 : vector<2x32xf32>
    %201 = arith.addf %199, %200 : vector<2x32xf32>
    %202 = arith.index_cast %c3_i32 : i32 to index
    %c0_88 = arith.constant 0 : index
    %c0_89 = arith.constant 0 : index
    %203 = vector.load %arg17[%202, %c0_88, %c0_89] : memref<8x2x32xf32, #tpu.memory_space<vmem>>, vector<1x2x32xf32>
    %204 = vector.shape_cast %203 : vector<1x2x32xf32> to vector<2x32xf32>
    %205 = vector.shape_cast %201 : vector<2x32xf32> to vector<1x2x32xf32>
    tpu.vector_store %arg17[%202, %c0_88, %c0_89], %205 {strides = array<i32>} : memref<8x2x32xf32, #tpu.memory_space<vmem>>, vector<1x2x32xf32>,
    %c4_i32 = arith.constant 4 : i32
    %206 = arith.index_cast %c4_i32 : i32 to index
    %c0_90 = arith.constant 0 : index
    %c0_91 = arith.constant 0 : index
    %207 = vector.load %arg16[%206, %c0_90, %c0_91] : memref<8x2x96xf32, #tpu.memory_space<vmem>>, vector<1x2x96xf32>
    %208 = vector.shape_cast %207 : vector<1x2x96xf32> to vector<2x96xf32>
    %cst_92 = arith.constant dense<0.000000e+00> : vector<2x96xf32>
    %209 = tpu.matmul %201, %60, %cst_92 {dimension_numbers = #tpu.dot_dimension_numbers<[1], [0], [0], [1], [0, 0, 1, 1], [], []>} : vector<2x32xf32>, vector<32x96xf32>, vector<2x96xf32> -> vector<2x96xf32>
    %210 = vector.extract_strided_slice %208 {offsets = [0, 0], sizes = [2, 32], strides = [1, 1]} : vector<2x96xf32> to vector<2x32xf32>
    %211 = vector.extract_strided_slice %209 {offsets = [0, 0], sizes = [2, 32], strides = [1, 1]} : vector<2x96xf32> to vector<2x32xf32>
    %212 = arith.addf %210, %211 : vector<2x32xf32>
    %213 = arith.negf %212 : vector<2x32xf32>
    %214 = math.exp %213 : vector<2x32xf32>
    %cst_93 = arith.constant 1.000000e+00 : f32
    %215 = vector.broadcast %cst_93 : f32 to vector<2x32xf32>
    %216 = arith.addf %215, %214 : vector<2x32xf32>
    %217 = arith.divf %215, %216 : vector<2x32xf32>
    %218 = vector.extract_strided_slice %208 {offsets = [0, 32], sizes = [2, 32], strides = [1, 1]} : vector<2x96xf32> to vector<2x32xf32>
    %219 = vector.extract_strided_slice %209 {offsets = [0, 32], sizes = [2, 32], strides = [1, 1]} : vector<2x96xf32> to vector<2x32xf32>
    %220 = arith.addf %218, %219 : vector<2x32xf32>
    %221 = arith.negf %220 : vector<2x32xf32>
    %222 = math.exp %221 : vector<2x32xf32>
    %cst_94 = arith.constant 1.000000e+00 : f32
    %223 = vector.broadcast %cst_94 : f32 to vector<2x32xf32>
    %224 = arith.addf %223, %222 : vector<2x32xf32>
    %225 = arith.divf %223, %224 : vector<2x32xf32>
    %226 = vector.extract_strided_slice %208 {offsets = [0, 64], sizes = [2, 32], strides = [1, 1]} : vector<2x96xf32> to vector<2x32xf32>
    %227 = vector.extract_strided_slice %209 {offsets = [0, 64], sizes = [2, 32], strides = [1, 1]} : vector<2x96xf32> to vector<2x32xf32>
    %228 = arith.addf %227, %63 : vector<2x32xf32>
    %229 = arith.mulf %217, %228 : vector<2x32xf32>
    %230 = arith.addf %226, %229 : vector<2x32xf32>
    %231 = math.tanh %230 : vector<2x32xf32>
    %cst_95 = arith.constant 1.000000e+00 : f32
    %232 = vector.broadcast %cst_95 : f32 to vector<2x32xf32>
    %233 = arith.subf %232, %225 : vector<2x32xf32>
    %234 = arith.mulf %233, %231 : vector<2x32xf32>
    %235 = arith.mulf %225, %201 : vector<2x32xf32>
    %236 = arith.addf %234, %235 : vector<2x32xf32>
    %237 = arith.index_cast %c4_i32 : i32 to index
    %c0_96 = arith.constant 0 : index
    %c0_97 = arith.constant 0 : index
    %238 = vector.load %arg17[%237, %c0_96, %c0_97] : memref<8x2x32xf32, #tpu.memory_space<vmem>>, vector<1x2x32xf32>
    %239 = vector.shape_cast %238 : vector<1x2x32xf32> to vector<2x32xf32>
    %240 = vector.shape_cast %236 : vector<2x32xf32> to vector<1x2x32xf32>
    tpu.vector_store %arg17[%237, %c0_96, %c0_97], %240 {strides = array<i32>} : memref<8x2x32xf32, #tpu.memory_space<vmem>>, vector<1x2x32xf32>,
    %c5_i32 = arith.constant 5 : i32
    %241 = arith.index_cast %c5_i32 : i32 to index
    %c0_98 = arith.constant 0 : index
    %c0_99 = arith.constant 0 : index
    %242 = vector.load %arg16[%241, %c0_98, %c0_99] : memref<8x2x96xf32, #tpu.memory_space<vmem>>, vector<1x2x96xf32>
    %243 = vector.shape_cast %242 : vector<1x2x96xf32> to vector<2x96xf32>
    %cst_100 = arith.constant dense<0.000000e+00> : vector<2x96xf32>
    %244 = tpu.matmul %236, %60, %cst_100 {dimension_numbers = #tpu.dot_dimension_numbers<[1], [0], [0], [1], [0, 0, 1, 1], [], []>} : vector<2x32xf32>, vector<32x96xf32>, vector<2x96xf32> -> vector<2x96xf32>
    %245 = vector.extract_strided_slice %243 {offsets = [0, 0], sizes = [2, 32], strides = [1, 1]} : vector<2x96xf32> to vector<2x32xf32>
    %246 = vector.extract_strided_slice %244 {offsets = [0, 0], sizes = [2, 32], strides = [1, 1]} : vector<2x96xf32> to vector<2x32xf32>
    %247 = arith.addf %245, %246 : vector<2x32xf32>
    %248 = arith.negf %247 : vector<2x32xf32>
    %249 = math.exp %248 : vector<2x32xf32>
    %cst_101 = arith.constant 1.000000e+00 : f32
    %250 = vector.broadcast %cst_101 : f32 to vector<2x32xf32>
    %251 = arith.addf %250, %249 : vector<2x32xf32>
    %252 = arith.divf %250, %251 : vector<2x32xf32>
    %253 = vector.extract_strided_slice %243 {offsets = [0, 32], sizes = [2, 32], strides = [1, 1]} : vector<2x96xf32> to vector<2x32xf32>
    %254 = vector.extract_strided_slice %244 {offsets = [0, 32], sizes = [2, 32], strides = [1, 1]} : vector<2x96xf32> to vector<2x32xf32>
    %255 = arith.addf %253, %254 : vector<2x32xf32>
    %256 = arith.negf %255 : vector<2x32xf32>
    %257 = math.exp %256 : vector<2x32xf32>
    %cst_102 = arith.constant 1.000000e+00 : f32
    %258 = vector.broadcast %cst_102 : f32 to vector<2x32xf32>
    %259 = arith.addf %258, %257 : vector<2x32xf32>
    %260 = arith.divf %258, %259 : vector<2x32xf32>
    %261 = vector.extract_strided_slice %243 {offsets = [0, 64], sizes = [2, 32], strides = [1, 1]} : vector<2x96xf32> to vector<2x32xf32>
    %262 = vector.extract_strided_slice %244 {offsets = [0, 64], sizes = [2, 32], strides = [1, 1]} : vector<2x96xf32> to vector<2x32xf32>
    %263 = arith.addf %262, %63 : vector<2x32xf32>
    %264 = arith.mulf %252, %263 : vector<2x32xf32>
    %265 = arith.addf %261, %264 : vector<2x32xf32>
    %266 = math.tanh %265 : vector<2x32xf32>
    %cst_103 = arith.constant 1.000000e+00 : f32
    %267 = vector.broadcast %cst_103 : f32 to vector<2x32xf32>
    %268 = arith.subf %267, %260 : vector<2x32xf32>
    %269 = arith.mulf %268, %266 : vector<2x32xf32>
    %270 = arith.mulf %260, %236 : vector<2x32xf32>
    %271 = arith.addf %269, %270 : vector<2x32xf32>
    %272 = arith.index_cast %c5_i32 : i32 to index
    %c0_104 = arith.constant 0 : index
    %c0_105 = arith.constant 0 : index
    %273 = vector.load %arg17[%272, %c0_104, %c0_105] : memref<8x2x32xf32, #tpu.memory_space<vmem>>, vector<1x2x32xf32>
    %274 = vector.shape_cast %273 : vector<1x2x32xf32> to vector<2x32xf32>
    %275 = vector.shape_cast %271 : vector<2x32xf32> to vector<1x2x32xf32>
    tpu.vector_store %arg17[%272, %c0_104, %c0_105], %275 {strides = array<i32>} : memref<8x2x32xf32, #tpu.memory_space<vmem>>, vector<1x2x32xf32>,
    %c6_i32 = arith.constant 6 : i32
    %276 = arith.index_cast %c6_i32 : i32 to index
    %c0_106 = arith.constant 0 : index
    %c0_107 = arith.constant 0 : index
    %277 = vector.load %arg16[%276, %c0_106, %c0_107] : memref<8x2x96xf32, #tpu.memory_space<vmem>>, vector<1x2x96xf32>
    %278 = vector.shape_cast %277 : vector<1x2x96xf32> to vector<2x96xf32>
    %cst_108 = arith.constant dense<0.000000e+00> : vector<2x96xf32>
    %279 = tpu.matmul %271, %60, %cst_108 {dimension_numbers = #tpu.dot_dimension_numbers<[1], [0], [0], [1], [0, 0, 1, 1], [], []>} : vector<2x32xf32>, vector<32x96xf32>, vector<2x96xf32> -> vector<2x96xf32>
    %280 = vector.extract_strided_slice %278 {offsets = [0, 0], sizes = [2, 32], strides = [1, 1]} : vector<2x96xf32> to vector<2x32xf32>
    %281 = vector.extract_strided_slice %279 {offsets = [0, 0], sizes = [2, 32], strides = [1, 1]} : vector<2x96xf32> to vector<2x32xf32>
    %282 = arith.addf %280, %281 : vector<2x32xf32>
    %283 = arith.negf %282 : vector<2x32xf32>
    %284 = math.exp %283 : vector<2x32xf32>
    %cst_109 = arith.constant 1.000000e+00 : f32
    %285 = vector.broadcast %cst_109 : f32 to vector<2x32xf32>
    %286 = arith.addf %285, %284 : vector<2x32xf32>
    %287 = arith.divf %285, %286 : vector<2x32xf32>
    %288 = vector.extract_strided_slice %278 {offsets = [0, 32], sizes = [2, 32], strides = [1, 1]} : vector<2x96xf32> to vector<2x32xf32>
    %289 = vector.extract_strided_slice %279 {offsets = [0, 32], sizes = [2, 32], strides = [1, 1]} : vector<2x96xf32> to vector<2x32xf32>
    %290 = arith.addf %288, %289 : vector<2x32xf32>
    %291 = arith.negf %290 : vector<2x32xf32>
    %292 = math.exp %291 : vector<2x32xf32>
    %cst_110 = arith.constant 1.000000e+00 : f32
    %293 = vector.broadcast %cst_110 : f32 to vector<2x32xf32>
    %294 = arith.addf %293, %292 : vector<2x32xf32>
    %295 = arith.divf %293, %294 : vector<2x32xf32>
    %296 = vector.extract_strided_slice %278 {offsets = [0, 64], sizes = [2, 32], strides = [1, 1]} : vector<2x96xf32> to vector<2x32xf32>
    %297 = vector.extract_strided_slice %279 {offsets = [0, 64], sizes = [2, 32], strides = [1, 1]} : vector<2x96xf32> to vector<2x32xf32>
    %298 = arith.addf %297, %63 : vector<2x32xf32>
    %299 = arith.mulf %287, %298 : vector<2x32xf32>
    %300 = arith.addf %296, %299 : vector<2x32xf32>
    %301 = math.tanh %300 : vector<2x32xf32>
    %cst_111 = arith.constant 1.000000e+00 : f32
    %302 = vector.broadcast %cst_111 : f32 to vector<2x32xf32>
    %303 = arith.subf %302, %295 : vector<2x32xf32>
    %304 = arith.mulf %303, %301 : vector<2x32xf32>
    %305 = arith.mulf %295, %271 : vector<2x32xf32>
    %306 = arith.addf %304, %305 : vector<2x32xf32>
    %307 = arith.index_cast %c6_i32 : i32 to index
    %c0_112 = arith.constant 0 : index
    %c0_113 = arith.constant 0 : index
    %308 = vector.load %arg17[%307, %c0_112, %c0_113] : memref<8x2x32xf32, #tpu.memory_space<vmem>>, vector<1x2x32xf32>
    %309 = vector.shape_cast %308 : vector<1x2x32xf32> to vector<2x32xf32>
    %310 = vector.shape_cast %306 : vector<2x32xf32> to vector<1x2x32xf32>
    tpu.vector_store %arg17[%307, %c0_112, %c0_113], %310 {strides = array<i32>} : memref<8x2x32xf32, #tpu.memory_space<vmem>>, vector<1x2x32xf32>,
    %c7_i32 = arith.constant 7 : i32
    %311 = arith.index_cast %c7_i32 : i32 to index
    %c0_114 = arith.constant 0 : index
    %c0_115 = arith.constant 0 : index
    %312 = vector.load %arg16[%311, %c0_114, %c0_115] : memref<8x2x96xf32, #tpu.memory_space<vmem>>, vector<1x2x96xf32>
    %313 = vector.shape_cast %312 : vector<1x2x96xf32> to vector<2x96xf32>
    %cst_116 = arith.constant dense<0.000000e+00> : vector<2x96xf32>
    %314 = tpu.matmul %306, %60, %cst_116 {dimension_numbers = #tpu.dot_dimension_numbers<[1], [0], [0], [1], [0, 0, 1, 1], [], []>} : vector<2x32xf32>, vector<32x96xf32>, vector<2x96xf32> -> vector<2x96xf32>
    %315 = vector.extract_strided_slice %313 {offsets = [0, 0], sizes = [2, 32], strides = [1, 1]} : vector<2x96xf32> to vector<2x32xf32>
    %316 = vector.extract_strided_slice %314 {offsets = [0, 0], sizes = [2, 32], strides = [1, 1]} : vector<2x96xf32> to vector<2x32xf32>
    %317 = arith.addf %315, %316 : vector<2x32xf32>
    %318 = arith.negf %317 : vector<2x32xf32>
    %319 = math.exp %318 : vector<2x32xf32>
    %cst_117 = arith.constant 1.000000e+00 : f32
    %320 = vector.broadcast %cst_117 : f32 to vector<2x32xf32>
    %321 = arith.addf %320, %319 : vector<2x32xf32>
    %322 = arith.divf %320, %321 : vector<2x32xf32>
    %323 = vector.extract_strided_slice %313 {offsets = [0, 32], sizes = [2, 32], strides = [1, 1]} : vector<2x96xf32> to vector<2x32xf32>
    %324 = vector.extract_strided_slice %314 {offsets = [0, 32], sizes = [2, 32], strides = [1, 1]} : vector<2x96xf32> to vector<2x32xf32>
    %325 = arith.addf %323, %324 : vector<2x32xf32>
    %326 = arith.negf %325 : vector<2x32xf32>
    %327 = math.exp %326 : vector<2x32xf32>
    %cst_118 = arith.constant 1.000000e+00 : f32
    %328 = vector.broadcast %cst_118 : f32 to vector<2x32xf32>
    %329 = arith.addf %328, %327 : vector<2x32xf32>
    %330 = arith.divf %328, %329 : vector<2x32xf32>
    %331 = vector.extract_strided_slice %313 {offsets = [0, 64], sizes = [2, 32], strides = [1, 1]} : vector<2x96xf32> to vector<2x32xf32>
    %332 = vector.extract_strided_slice %314 {offsets = [0, 64], sizes = [2, 32], strides = [1, 1]} : vector<2x96xf32> to vector<2x32xf32>
    %333 = arith.addf %332, %63 : vector<2x32xf32>
    %334 = arith.mulf %322, %333 : vector<2x32xf32>
    %335 = arith.addf %331, %334 : vector<2x32xf32>
    %336 = math.tanh %335 : vector<2x32xf32>
    %cst_119 = arith.constant 1.000000e+00 : f32
    %337 = vector.broadcast %cst_119 : f32 to vector<2x32xf32>
    %338 = arith.subf %337, %330 : vector<2x32xf32>
    %339 = arith.mulf %338, %336 : vector<2x32xf32>
    %340 = arith.mulf %330, %306 : vector<2x32xf32>
    %341 = arith.addf %339, %340 : vector<2x32xf32>
    %342 = arith.index_cast %c7_i32 : i32 to index
    %c0_120 = arith.constant 0 : index
    %c0_121 = arith.constant 0 : index
    %343 = vector.load %arg17[%342, %c0_120, %c0_121] : memref<8x2x32xf32, #tpu.memory_space<vmem>>, vector<1x2x32xf32>
    %344 = vector.shape_cast %343 : vector<1x2x32xf32> to vector<2x32xf32>
    %345 = vector.shape_cast %341 : vector<2x32xf32> to vector<1x2x32xf32>
    tpu.vector_store %arg17[%342, %c0_120, %c0_121], %345 {strides = array<i32>} : memref<8x2x32xf32, #tpu.memory_space<vmem>>, vector<1x2x32xf32>,
    %c8_i32 = arith.constant 8 : i32
    %c0_122 = arith.constant 0 : index
    %c0_123 = arith.constant 0 : index
    %c0_124 = arith.constant 0 : index
    %346 = vector.load %arg14[%c0_122, %c0_123, %c0_124] : memref<1x2x32xf32, #tpu.memory_space<vmem>>, vector<1x2x32xf32>
    %347 = vector.shape_cast %346 : vector<1x2x32xf32> to vector<2x32xf32>
    %348 = vector.shape_cast %341 : vector<2x32xf32> to vector<1x2x32xf32>
    tpu.vector_store %arg14[%c0_122, %c0_123, %c0_124], %348 {strides = array<i32>} : memref<1x2x32xf32, #tpu.memory_space<vmem>>, vector<1x2x32xf32>,
    %c0_125 = arith.constant 0 : index
    %c0_126 = arith.constant 0 : index
    %c0_127 = arith.constant 0 : index
    %349 = vector.load %arg17[%c0_125, %c0_126, %c0_127] : memref<8x2x32xf32, #tpu.memory_space<vmem>>, vector<8x2x32xf32>
    %350 = vector.extract_strided_slice %349 {offsets = [0, 0, 0], sizes = [8, 1, 32], strides = [1, 1, 1]} : vector<8x2x32xf32> to vector<8x1x32xf32>
    %351 = vector.shape_cast %350 : vector<8x1x32xf32> to vector<8x32xf32>
    %352 = vector.extract_strided_slice %349 {offsets = [0, 1, 0], sizes = [8, 1, 32], strides = [1, 1, 1]} : vector<8x2x32xf32> to vector<8x1x32xf32>
    %353 = vector.shape_cast %352 : vector<8x1x32xf32> to vector<8x32xf32>
    %354 = tpu.concatenate %351, %353 in 0 : vector<8x32xf32>, vector<8x32xf32> -> vector<16x32xf32>
    %c0_128 = arith.constant 0 : index
    %c0_129 = arith.constant 0 : index
    %355 = vector.load %arg9[%c0_128, %c0_129] : memref<32x32xf32, #tpu.memory_space<vmem>>, vector<32x32xf32>
    %c0_130 = arith.constant 0 : index
    %c0_131 = arith.constant 0 : index
    %356 = vector.load %arg8[%c0_130, %c0_131] : memref<32x32xf32, #tpu.memory_space<vmem>>, vector<32x32xf32>
    %cst_132 = arith.constant dense<0.000000e+00> : vector<16x32xf32>
    %357 = tpu.matmul %354, %356, %cst_132 {dimension_numbers = #tpu.dot_dimension_numbers<[1], [0], [0], [1], [0, 0, 1, 1], [], []>} : vector<16x32xf32>, vector<32x32xf32>, vector<16x32xf32> -> vector<16x32xf32>
    %c0_133 = arith.constant 0 : index
    %c0_134 = arith.constant 0 : index
    %358 = vector.load %arg10[%c0_133, %c0_134] : memref<1x32xf32, #tpu.memory_space<vmem>>, vector<1x32xf32>
    %359 = vector.broadcast %358 : vector<1x32xf32> to vector<16x32xf32>
    %360 = arith.addf %357, %359 : vector<16x32xf32>
    %361 = vector.extract_strided_slice %354 {offsets = [0, 0], sizes = [8, 32], strides = [1, 1]} : vector<16x32xf32> to vector<8x32xf32>
    %c0_135 = arith.constant 0 : index
    %c0_136 = arith.constant 0 : index
    %c0_137 = arith.constant 0 : index
    %362 = vector.load %arg3[%c0_135, %c0_136, %c0_137] : memref<2x10x32xf32, #tpu.memory_space<vmem>>, vector<1x10x32xf32>
    %363 = vector.shape_cast %362 : vector<1x10x32xf32> to vector<10x32xf32>
    %cst_138 = arith.constant dense<0.000000e+00> : vector<8x10xf32>
    %364 = tpu.matmul %361, %363, %cst_138 {dimension_numbers = #tpu.dot_dimension_numbers<[1], [1], [0], [0], [0, 0, 1, 0], [], []>} : vector<8x32xf32>, vector<10x32xf32>, vector<8x10xf32> -> vector<8x10xf32>
    %cst_139 = arith.constant dense<0xFF800000> : vector<8xf32>
    %365 = vector.multi_reduction <maximumf>, %364, %cst_139 [1] : vector<8x10xf32> to vector<8xf32>
    %366 = vector.shape_cast %365 : vector<8xf32> to vector<8x1xf32>
    %367 = vector.broadcast %366 : vector<8x1xf32> to vector<8x10xf32>
    %368 = arith.subf %364, %367 : vector<8x10xf32>
    %369 = math.exp %368 : vector<8x10xf32>
    %cst_140 = arith.constant dense<0.000000e+00> : vector<8xf32>
    %370 = vector.multi_reduction <add>, %369, %cst_140 [1] : vector<8x10xf32> to vector<8xf32>
    %371 = vector.shape_cast %370 : vector<8xf32> to vector<8x1xf32>
    %372 = vector.broadcast %371 : vector<8x1xf32> to vector<8x10xf32>
    %373 = arith.divf %369, %372 : vector<8x10xf32>
    %c0_141 = arith.constant 0 : index
    %c0_142 = arith.constant 0 : index
    %374 = vector.load %arg15[%c0_141, %c0_142] : memref<16x10xf32, #tpu.memory_space<vmem>>, vector<8x10xf32>
    tpu.vector_store %arg15[%c0_141, %c0_142], %373 {strides = array<i32>} : memref<16x10xf32, #tpu.memory_space<vmem>>, vector<8x10xf32>,
    %cst_143 = arith.constant dense<0.000000e+00> : vector<8x32xf32>
    %375 = tpu.matmul %373, %363, %cst_143 {dimension_numbers = #tpu.dot_dimension_numbers<[1], [0], [0], [1], [0, 0, 1, 1], [], []>} : vector<8x10xf32>, vector<10x32xf32>, vector<8x32xf32> -> vector<8x32xf32>
    %376 = vector.extract_strided_slice %360 {offsets = [0, 0], sizes = [8, 32], strides = [1, 1]} : vector<16x32xf32> to vector<8x32xf32>
    %cst_144 = arith.constant dense<0.000000e+00> : vector<8x32xf32>
    %377 = tpu.matmul %375, %355, %cst_144 {dimension_numbers = #tpu.dot_dimension_numbers<[1], [0], [0], [1], [0, 0, 1, 1], [], []>} : vector<8x32xf32>, vector<32x32xf32>, vector<8x32xf32> -> vector<8x32xf32>
    %378 = arith.addf %376, %377 : vector<8x32xf32>
    %379 = math.tanh %378 : vector<8x32xf32>
    %c0_145 = arith.constant 0 : index
    %c0_146 = arith.constant 0 : index
    %380 = vector.load %arg18[%c0_145, %c0_146] : memref<16x32xf32, #tpu.memory_space<vmem>>, vector<8x32xf32>
    tpu.vector_store %arg18[%c0_145, %c0_146], %379 {strides = array<i32>} : memref<16x32xf32, #tpu.memory_space<vmem>>, vector<8x32xf32>,
    %381 = vector.extract_strided_slice %354 {offsets = [8, 0], sizes = [8, 32], strides = [1, 1]} : vector<16x32xf32> to vector<8x32xf32>
    %c1_147 = arith.constant 1 : index
    %c0_148 = arith.constant 0 : index
    %c0_149 = arith.constant 0 : index
    %382 = vector.load %arg3[%c1_147, %c0_148, %c0_149] : memref<2x10x32xf32, #tpu.memory_space<vmem>>, vector<1x10x32xf32>
    %383 = vector.shape_cast %382 : vector<1x10x32xf32> to vector<10x32xf32>
    %cst_150 = arith.constant dense<0.000000e+00> : vector<8x10xf32>
    %384 = tpu.matmul %381, %383, %cst_150 {dimension_numbers = #tpu.dot_dimension_numbers<[1], [1], [0], [0], [0, 0, 1, 0], [], []>} : vector<8x32xf32>, vector<10x32xf32>, vector<8x10xf32> -> vector<8x10xf32>
    %cst_151 = arith.constant dense<0xFF800000> : vector<8xf32>
    %385 = vector.multi_reduction <maximumf>, %384, %cst_151 [1] : vector<8x10xf32> to vector<8xf32>
    %386 = vector.shape_cast %385 : vector<8xf32> to vector<8x1xf32>
    %387 = vector.broadcast %386 : vector<8x1xf32> to vector<8x10xf32>
    %388 = arith.subf %384, %387 : vector<8x10xf32>
    %389 = math.exp %388 : vector<8x10xf32>
    %cst_152 = arith.constant dense<0.000000e+00> : vector<8xf32>
    %390 = vector.multi_reduction <add>, %389, %cst_152 [1] : vector<8x10xf32> to vector<8xf32>
    %391 = vector.shape_cast %390 : vector<8xf32> to vector<8x1xf32>
    %392 = vector.broadcast %391 : vector<8x1xf32> to vector<8x10xf32>
    %393 = arith.divf %389, %392 : vector<8x10xf32>
    %c8 = arith.constant 8 : index
    %c0_153 = arith.constant 0 : index
    %394 = vector.load %arg15[%c8, %c0_153] : memref<16x10xf32, #tpu.memory_space<vmem>>, vector<8x10xf32>
    tpu.vector_store %arg15[%c8, %c0_153], %393 {strides = array<i32>} : memref<16x10xf32, #tpu.memory_space<vmem>>, vector<8x10xf32>,
    %cst_154 = arith.constant dense<0.000000e+00> : vector<8x32xf32>
    %395 = tpu.matmul %393, %383, %cst_154 {dimension_numbers = #tpu.dot_dimension_numbers<[1], [0], [0], [1], [0, 0, 1, 1], [], []>} : vector<8x10xf32>, vector<10x32xf32>, vector<8x32xf32> -> vector<8x32xf32>
    %396 = vector.extract_strided_slice %360 {offsets = [8, 0], sizes = [8, 32], strides = [1, 1]} : vector<16x32xf32> to vector<8x32xf32>
    %cst_155 = arith.constant dense<0.000000e+00> : vector<8x32xf32>
    %397 = tpu.matmul %395, %355, %cst_155 {dimension_numbers = #tpu.dot_dimension_numbers<[1], [0], [0], [1], [0, 0, 1, 1], [], []>} : vector<8x32xf32>, vector<32x32xf32>, vector<8x32xf32> -> vector<8x32xf32>
    %398 = arith.addf %396, %397 : vector<8x32xf32>
    %399 = math.tanh %398 : vector<8x32xf32>
    %c8_156 = arith.constant 8 : index
    %c0_157 = arith.constant 0 : index
    %400 = vector.load %arg18[%c8_156, %c0_157] : memref<16x32xf32, #tpu.memory_space<vmem>>, vector<8x32xf32>
    tpu.vector_store %arg18[%c8_156, %c0_157], %399 {strides = array<i32>} : memref<16x32xf32, #tpu.memory_space<vmem>>, vector<8x32xf32>,
    %c0_158 = arith.constant 0 : index
    %c0_159 = arith.constant 0 : index
    %401 = vector.load %arg18[%c0_158, %c0_159] : memref<16x32xf32, #tpu.memory_space<vmem>>, vector<16x32xf32>
    %c0_160 = arith.constant 0 : index
    %c0_161 = arith.constant 0 : index
    %402 = vector.load %arg11[%c0_160, %c0_161] : memref<32x16xf32, #tpu.memory_space<vmem>>, vector<32x16xf32>
    %cst_162 = arith.constant dense<0.000000e+00> : vector<16x16xf32>
    %403 = tpu.matmul %401, %402, %cst_162 {dimension_numbers = #tpu.dot_dimension_numbers<[1], [0], [0], [1], [0, 0, 1, 1], [], []>} : vector<16x32xf32>, vector<32x16xf32>, vector<16x16xf32> -> vector<16x16xf32>
    %c0_163 = arith.constant 0 : index
    %c0_164 = arith.constant 0 : index
    %404 = vector.load %arg12[%c0_163, %c0_164] : memref<1x16xf32, #tpu.memory_space<vmem>>, vector<1x16xf32>
    %405 = vector.broadcast %404 : vector<1x16xf32> to vector<16x16xf32>
    %406 = arith.addf %403, %405 : vector<16x16xf32>
    %c0_165 = arith.constant 0 : index
    %c0_166 = arith.constant 0 : index
    %407 = vector.load %arg13[%c0_165, %c0_166] : memref<16x16xf32, #tpu.memory_space<vmem>>, vector<16x16xf32>
    tpu.vector_store %arg13[%c0_165, %c0_166], %406 {strides = array<i32>} : memref<16x16xf32, #tpu.memory_space<vmem>>, vector<16x16xf32>,
    return
  }
  func.func @transform_0(%arg0: i32) -> (i32, i32, i32) {
    %c0_i32 = arith.constant 0 : i32
    %c0_i32_0 = arith.constant 0 : i32
    %c0_i32_1 = arith.constant 0 : i32
    %c0_i32_2 = arith.constant 0 : i32
    return %c0_i32, %c0_i32_0, %c0_i32_1 : i32, i32, i32
  }
  func.func @transform_1(%arg0: i32) -> (i32, i32, i32) {
    %c0_i32 = arith.constant 0 : i32
    %c0_i32_0 = arith.constant 0 : i32
    %c0_i32_1 = arith.constant 0 : i32
    %c0_i32_2 = arith.constant 0 : i32
    return %c0_i32, %c0_i32_0, %c0_i32_1 : i32, i32, i32
  }
  func.func @transform_2(%arg0: i32) -> (i32, i32, i32) {
    %c0_i32 = arith.constant 0 : i32
    %c0_i32_0 = arith.constant 0 : i32
    %c0_i32_1 = arith.constant 0 : i32
    %c0_i32_2 = arith.constant 0 : i32
    return %c0_i32, %c0_i32_0, %c0_i32_1 : i32, i32, i32
  }
  func.func @transform_3(%arg0: i32) -> (i32, i32) {
    %c0_i32 = arith.constant 0 : i32
    %c0_i32_0 = arith.constant 0 : i32
    %c0_i32_1 = arith.constant 0 : i32
    return %c0_i32, %c0_i32_0 : i32, i32
  }
  func.func @transform_4(%arg0: i32) -> (i32, i32) {
    %c0_i32 = arith.constant 0 : i32
    %c0_i32_0 = arith.constant 0 : i32
    %c0_i32_1 = arith.constant 0 : i32
    return %c0_i32, %c0_i32_0 : i32, i32
  }
  func.func @transform_5(%arg0: i32) -> (i32, i32) {
    %c0_i32 = arith.constant 0 : i32
    %c0_i32_0 = arith.constant 0 : i32
    %c0_i32_1 = arith.constant 0 : i32
    return %c0_i32, %c0_i32_0 : i32, i32
  }
  func.func @transform_6(%arg0: i32) -> (i32, i32) {
    %c0_i32 = arith.constant 0 : i32
    %c0_i32_0 = arith.constant 0 : i32
    %c0_i32_1 = arith.constant 0 : i32
    return %c0_i32, %c0_i32_0 : i32, i32
  }
  func.func @transform_7(%arg0: i32) -> (i32, i32) {
    %c0_i32 = arith.constant 0 : i32
    %c0_i32_0 = arith.constant 0 : i32
    %c0_i32_1 = arith.constant 0 : i32
    return %c0_i32, %c0_i32_0 : i32, i32
  }
  func.func @transform_8(%arg0: i32) -> (i32, i32) {
    %c0_i32 = arith.constant 0 : i32
    %c0_i32_0 = arith.constant 0 : i32
    %c0_i32_1 = arith.constant 0 : i32
    return %c0_i32, %c0_i32_0 : i32, i32
  }
  func.func @transform_9(%arg0: i32) -> (i32, i32) {
    %c0_i32 = arith.constant 0 : i32
    %c0_i32_0 = arith.constant 0 : i32
    %c0_i32_1 = arith.constant 0 : i32
    return %c0_i32, %c0_i32_0 : i32, i32
  }
  func.func @transform_10(%arg0: i32) -> (i32, i32) {
    %c0_i32 = arith.constant 0 : i32
    %c0_i32_0 = arith.constant 0 : i32
    %c0_i32_1 = arith.constant 0 : i32
    return %c0_i32, %c0_i32_0 : i32, i32
  }
  func.func @transform_11(%arg0: i32) -> (i32, i32) {
    %c0_i32 = arith.constant 0 : i32
    %c0_i32_0 = arith.constant 0 : i32
    %c0_i32_1 = arith.constant 0 : i32
    return %c0_i32, %c0_i32_0 : i32, i32
  }
  func.func @transform_12(%arg0: i32) -> (i32, i32) {
    %c0_i32 = arith.constant 0 : i32
    %c0_i32_0 = arith.constant 0 : i32
    %c0_i32_1 = arith.constant 0 : i32
    return %c0_i32, %c0_i32_0 : i32, i32
  }
  func.func @transform_13(%arg0: i32) -> (i32, i32, i32) {
    %c0_i32 = arith.constant 0 : i32
    %c0_i32_0 = arith.constant 0 : i32
    %c0_i32_1 = arith.constant 0 : i32
    %c0_i32_2 = arith.constant 0 : i32
    return %c0_i32, %c0_i32_0, %c0_i32_1 : i32, i32, i32
  }
  func.func @transform_14(%arg0: i32) -> (i32, i32) {
    %c0_i32 = arith.constant 0 : i32
    %c0_i32_0 = arith.constant 0 : i32
    %c0_i32_1 = arith.constant 0 : i32
    return %c0_i32, %c0_i32_0 : i32, i32
  }
}

</mosaic_0001>

<bundles_post_ra>
// kernel: attn_decoder_forward.1
= control target key start
LH: loop header
LB: loop body
LE: loop exit
PB: predicated region body
PF: predicated region fallthrough
CT: control target
= control target key end

     0   :  { %20 = vsyncpa [#allocation6], 0  ;;  %s3706_s0 = inlined_call_operand.vmem [shape: f32[8,2,32], index: 0, kind: input, shape index: {}]   ;;  %s3707_s1 = inlined_call_operand.vmem [shape: f32[1,2,32], index: 1, kind: input, shape index: {}]   ;;  %s3708_s2 = inlined_call_operand.vmem [shape: f32[2,10,32], index: 2, kind: input, shape index: {}]   ;;  %s3709_s3 = inlined_call_operand.vmem [shape: f32[32,96], index: 3, kind: input, shape index: {}]   ;;  %s3710_s4 = inlined_call_operand.vmem [shape: f32[32,96], index: 4, kind: input, shape index: {}]   ;;  %s3711_s5 = inlined_call_operand.hbm [shape: f32[1,96], index: 5, kind: input, shape index: {}]   ;;  %s3712_s6 = inlined_call_operand.hbm [shape: f32[1,32], index: 6, kind: input, shape index: {}]   ;;  %s3713_s7 = inlined_call_operand.vmem [shape: f32[32,32], index: 7, kind: input, shape index: {}]   ;;  %s3714_s8 = inlined_call_operand.hbm [shape: f32[32,32], index: 8, kind: input, shape index: {}]   ;;  %s3715_s9 = inlined_call_operand.hbm [shape: f32[1,32], index: 9, kind: input, shape index: {}]   ;;  %s3716_s10 = inlined_call_operand.vmem [shape: f32[32,16], index: 10, kind: input, shape index: {}]   ;;  %s3717_s11 = inlined_call_operand.hbm [shape: f32[1,16], index: 11, kind: input, shape index: {}]   ;;  %s3718_s12 = inlined_call_operand.vmem [shape: f32[16,16], index: 12, kind: output, shape index: {0}]   ;;  %s3719_s13 = inlined_call_operand.hbm [shape: f32[1,2,32], index: 13, kind: output, shape index: {1}]   ;;  %s3720_s14 = inlined_call_operand.hbm [shape: f32[16,10], index: 14, kind: output, shape index: {2}]  }
   0x1   :  { %21 = vsyncpa [#allocation9], 0 }
   0x2   :  { %22 = vsyncpa [#allocation12], 0 }
   0x3   :  { %23 = vsyncpa [#allocation7], 0 }
   0x4   :  { %24 = vsyncpa [#allocation16], 0  ;;  %s3159_s29 = smov [#allocation8]   ;;  %s3160_s15 = smov [#allocation11]  }
   0x5   :  { %s51_s30 = sshll.u32 %s3159_s29, 4  ;;  %s75_s16 = sshll.u32 %s3160_s15, 4  ;;  %s52_s30 = int_to_ptr.vmem [resolvable:$true] %s51_s30  ;;  %s76_s16 = int_to_ptr.vmem [resolvable:$true] %s75_s16 }
   0x6   :  { %s2995_s19 = scalar_lea.hbm %s3712_s6, 16 }
   0x7   :  { %p2996_p0 = scmp.ne.s32.totalorder %s3712_s6, %s2995_s19  ;;  %p2999_p1 = scmp.lt.u32.totalorder %s2995_s19, %s3712_s6 }
   0x9   :  { %p3001_p2 = pnand %p2999_p1, %p2996_p0 }
   0xb   :  { %3004 = shalt.err (!%p3001_p2)
}
   0xc   :  { %s3005_s24 = scalar_lea.vmem %s52_s30, 16  ;;  %s3009_s25 = scalar_lea.vmem %s52_s30, 32 }
   0xd   :  { %p3006_p3 = scmp.ne.s32.totalorder %s52_s30, %s3005_s24  ;;  %p3010_p4 = scmp.lt.s32.totalorder %s52_s30, %s52_s30 }
   0xe   :  { %p3011_p5 = scmp.lt.s32.totalorder %s3009_s25, %s3005_s24 }
  0x10   :  { %p3012_p6 = por %p3011_p5, %p3010_p4 }
  0x12   :  { %p3013_p7 = pnand %p3012_p6, %p3006_p3 }
  0x14   :  { %3016 = shalt.err (!%p3013_p7)
}
  0x15   :  { %54 = dma.hbm_to_vmem [thread:$0]  %s3712_s6, 16, %s52_s30, [#allocation9]  }
  0x16   :  { %s3017_s15 = scalar_lea.hbm %s3715_s9, 16 }
  0x17   :  { %p3018_p8 = scmp.ne.s32.totalorder %s3715_s9, %s3017_s15  ;;  %p3021_p9 = scmp.lt.u32.totalorder %s3017_s15, %s3715_s9 }
  0x19   :  { %p3023_p10 = pnand %p3021_p9, %p3018_p8 }
  0x1b   :  { %3026 = shalt.err (!%p3023_p10)
}
  0x1c   :  { %s3027_s21 = scalar_lea.vmem %s76_s16, 16  ;;  %s3031_s22 = scalar_lea.vmem %s76_s16, 32 }
  0x1d   :  { %p3028_p11 = scmp.ne.s32.totalorder %s76_s16, %s3027_s21  ;;  %p3032_p12 = scmp.lt.s32.totalorder %s76_s16, %s76_s16 }
  0x1e   :  { %p3033_p13 = scmp.lt.s32.totalorder %s3031_s22, %s3027_s21 }
  0x20   :  { %p3034_p0 = por %p3033_p13, %p3032_p12 }
  0x22   :  { %p3035_p1 = pnand %p3034_p0, %p3028_p11 }
  0x24   :  { %3038 = shalt.err (!%p3035_p1)
}
  0x25   :  { %78 = dma.hbm_to_vmem [thread:$0]  %s3715_s9, 16, %s76_s16, [#allocation12]  }
  0x26   :  { %s3161_s23 = smov [#allocation5]   ;;  %s3162_s25 = smov [#allocation10]  }
  0x27   :  { %s41_s24 = sshll.u32 %s3161_s23, 4  ;;  %s62_s26 = sshll.u32 %s3162_s25, 4  ;;  %s42_s24 = int_to_ptr.vmem [resolvable:$true] %s41_s24  ;;  %s3274_s26 = int_to_ptr.vmem [resolvable:$true] %s62_s26 }
  0x28   :  { %s3039_s29 = scalar_lea.hbm %s3711_s5, 16 }
  0x29   :  { %p3040_p2 = scmp.ne.s32.totalorder %s3711_s5, %s3039_s29  ;;  %p3043_p3 = scmp.lt.u32.totalorder %s3039_s29, %s3711_s5 }
  0x2b   :  { %p3045_p4 = pnand %p3043_p3, %p3040_p2 }
  0x2d   :  { %3048 = shalt.err (!%p3045_p4)
}
  0x2e   :  { %s3049_s9 = scalar_lea.vmem %s42_s24, 16  ;;  %s3053_s16 = scalar_lea.vmem %s42_s24, 32 }
  0x2f   :  { %p3050_p5 = scmp.ne.s32.totalorder %s42_s24, %s3049_s9  ;;  %p3054_p6 = scmp.lt.s32.totalorder %s42_s24, %s42_s24 }
  0x30   :  { %p3055_p7 = scmp.lt.s32.totalorder %s3053_s16, %s3049_s9 }
  0x32   :  { %p3056_p8 = por %p3055_p7, %p3054_p6 }
  0x34   :  { %p3057_p9 = pnand %p3056_p8, %p3050_p5 }
  0x36   :  { %3060 = shalt.err (!%p3057_p9)
}
  0x37   :  { %44 = dma.hbm_to_vmem [thread:$0]  %s3711_s5, 16, %s42_s24, [#allocation6]  }
  0x38   :  { %s3061_s30 = scalar_lea.hbm %s3714_s8, 512 }
  0x39   :  { %p3062_p10 = scmp.ne.s32.totalorder %s3714_s8, %s3061_s30  ;;  %p3065_p11 = scmp.lt.u32.totalorder %s3061_s30, %s3714_s8 }
  0x3b   :  { %p3067_p12 = pnand %p3065_p11, %p3062_p10 }
  0x3d   :  { %3070 = shalt.err (!%p3067_p12)
}
  0x3e   :  { %s3071_s29 = scalar_lea.vmem %s3274_s26, 512  ;;  %p3076_p0 = scmp.lt.s32.totalorder %s3274_s26, %s3274_s26 }
  0x3f   :  { %p3072_p13 = scmp.ne.s32.totalorder %s3274_s26, %s3071_s29  ;;  %p3077_p1 = scmp.lt.s32.totalorder %s3071_s29, %s3071_s29 }
  0x41   :  { %p3078_p2 = por %p3077_p1, %p3076_p0 }
  0x43   :  { %p3079_p3 = pnand %p3078_p2, %p3072_p13 }
  0x45   :  { %3082 = shalt.err (!%p3079_p3)
}
  0x46   :  { %s3163_s5 = smov 128   ;;  %s3164_s24 = smov 8  }
  0x47   :  { %68 = dma.hbm_to_vmem [thread:$0]  %s3714_s8, 512, %s3274_s26, [#allocation9], %s3163_s5, %s3163_s5, %s3164_s24  }
  0x48   :  { %s3165_s18 = smov [#allocation13]   ;;  %s3083_s20 = scalar_lea.hbm %s3717_s11, 16 }
  0x49   :  { %s87_s19 = sshll.u32 %s3165_s18, 4  ;;  %p3084_p4 = scmp.ne.s32.totalorder %s3717_s11, %s3083_s20  ;;  %s88_s19 = int_to_ptr.vmem [resolvable:$true] %s87_s19 }
  0x4a   :  { %p3087_p5 = scmp.lt.u32.totalorder %s3083_s20, %s3717_s11 }
  0x4c   :  { %p3089_p6 = pnand %p3087_p5, %p3084_p4 }
  0x4e   :  { %3092 = shalt.err (!%p3089_p6)
}
  0x4f   :  { %s3093_s23 = scalar_lea.vmem %s88_s19, 16  ;;  %s3097_s8 = scalar_lea.vmem %s88_s19, 32 }
  0x50   :  { %p3094_p7 = scmp.ne.s32.totalorder %s88_s19, %s3093_s23  ;;  %p3098_p8 = scmp.lt.s32.totalorder %s88_s19, %s88_s19 }
  0x51   :  { %p3099_p9 = scmp.lt.s32.totalorder %s3097_s8, %s3093_s23 }
  0x53   :  { %p3100_p10 = por %p3099_p9, %p3098_p8 }
  0x55   :  { %p3101_p11 = pnand %p3100_p10, %p3094_p7 }
  0x57   :  { %3104 = shalt.err (!%p3101_p11)
}
  0x58   :  { %90 = dma.hbm_to_vmem [thread:$0]  %s3717_s11, 16, %s88_s19, [#allocation12]  }
  0x59   :  { %3149 = dma.done.wait [#allocation6], 16  }
  0x5a   :  { %3150 = vsyncadd [#allocation6], 4294967280 }
  0x5b   :  { %3151 = dma.done.wait [#allocation9], 528  }
  0x5c   :  { %3152 = vsyncadd [#allocation9], 4294966768 }
  0x5d   :  { %3153 = dma.done.wait [#allocation12], 32  }
  0x5e   :  { %3154 = vsyncadd [#allocation12], 4294967264  ;;  %v3166_v0 = vmov 0.0|0.0   ;;  %vm3167_vm0 = vmmov 0   ;;  %v3168_v1 = vmov 0.0   ;;  %v106_v2 = vld [vmem:[%s3709_s3] sm:$0xff] }
  0x5f   :  { %2779 = vmatprep.subr.bf16.mxu0 %v3166_v0  ;;  %2539 = vmatprep.mubr.msk.f32.mxu0 %vm3167_vm0, %v3168_v1  ;;  %v107_v3 = vld [vmem:[%s3709_s3 + $0x8] sm:$0xff]  ;;  %v108_v4 = vld [vmem:[%s3709_s3 + $0x10] sm:$0xff]  ;;  %v109_v6 = vld [vmem:[%s3709_s3 + $0x18] sm:$0xff]  ;;  %s3169_s9 = smov 64   ;;  %vm118_vm1 = vcmask 261120   ;;  %vm192_vm2 = vcmask 779264  }
  0x60   :  { %2785 = vmatprep.subr.bf16.mxu1 %v3166_v0  ;;  %2550 = vmatprep.mubr.msk.f32.mxu1 %vm3167_vm0, %v3168_v1  ;;  %v3335_v5 = vpack.c.bf16 %v107_v3, %v106_v2  ;;  %v3341_v7 = vpack.c.bf16 %v109_v6, %v108_v4  ;;  %v2380_v8 = vld [vmem:[#allocation8] ss:$0 sm:$0xff]  ;;  %v117_v9 = vld [vmem:[%s3706_s0] sm:$0x3]  ;;  %v2368_v10 = vld [vmem:[%s3706_s0 + $0x4] sm:$0x3] }
  0x61   :  { %825 = vrot.lane.b32.xlu0 %v2380_v8, %s3169_s9  ;;  %v2372_v11 = vld [vmem:[%s3706_s0 + $0x8] sm:$0x3]  ;;  %v733_v12 = vld [vmem:[%s3710_s4] sm:$0xff]  ;;  %v2376_v14 = vld [vmem:[%s3706_s0 + $0xc] sm:$0x3]  ;;  %s3171_s3 = smov 96  }
  0x62   :  { %2781 = vmatpush3.bf16.msra.mxu0 %v3335_v5  ;;  %2787 = vmatpush3.bf16.msra.mxu1 %v3335_v5  ;;  %v734_v13 = vld [vmem:[%s3710_s4 + $0x8] sm:$0xff]  ;;  %v735_v16 = vld [vmem:[%s3710_s4 + $0x10] sm:$0xff]  ;;  %v736_v17 = vld [vmem:[%s3710_s4 + $0x18] sm:$0xff]  ;;  %vm855_vm3 = vcmask 254976   ;;  %vm1617_vm5 = vcmask 1041409   ;;  %vm1620_vm6 = vcmask 1042434  }
  0x63   :  { %2782 = vmatprep.subr.bf16.mxu0 %v3166_v0  ;;  %2788 = vmatprep.subr.bf16.mxu1 %v3166_v0  ;;  %v3389_v15 = vpack.c.bf16 %v734_v13, %v733_v12  ;;  %v3400_v18 = vpack.c.bf16 %v736_v17, %v735_v16  ;;  %v743_v19 = vld [vmem:[%s3707_s1] sm:$0x3]  ;;  %v3417_v20 = vld [vmem:[#allocation5] ss:$0 sm:$0xff]  ;;  %s3170_s1 = smov 32   ;;  %vm3575_vm4 = vmpackc.low %vm118_vm1, %vm118_vm1  ;;  %vm1623_vm7 = vcmask 1043459  }
  0x64   :  { %v2366_v47 = vld [vmem:[%s3706_s0 + $0x2] sm:$0x3]  ;;  %v2370_v48 = vld [vmem:[%s3706_s0 + $0x6] sm:$0x3]  ;;  %v2374_v50 = vld [vmem:[%s3706_s0 + $0xa] sm:$0x3] }
  0x65   :  { %v2378_v51 = vld [vmem:[%s3706_s0 + $0xe] sm:$0x3]  ;;  %vm1626_vm8 = vcmask 1044484   ;;  %vm1629_vm9 = vcmask 1045509   ;;  %vm1632_vm10 = vcmask 1046534   ;;  %vm1635_vm11 = vcmask 1047559  }
  0x66   :  { %2784 = vmatpush3.bf16.msra.mxu0 %v3341_v7  ;;  %2790 = vmatpush3.bf16.msra.mxu1 %v3341_v7  ;;  %vm1823_vm12 = vcmask 80896   ;;  %vm1839_vm13 = vcmask 1041408   ;;  %vm3172_vm14 = vmmov 1   ;;  %s3173_s30 = smov [#allocation14]   ;;  %s3174_s23 = smov [#allocation15]  }
  0x67   :  { %2791 = vmatprep.subr.bf16.mxu0 %v3166_v0  ;;  %2797 = vmatprep.subr.bf16.mxu1 %v3166_v0  ;;  %vm3611_vm15 = vmpackc.low %vm1839_vm13, %vm3172_vm14  ;;  %s2335_s0 = sshll.u32 %s3173_s30, 4  ;;  %s2344_s8 = sshll.u32 %s3174_s23, 4  ;;  %s2336_s0 = int_to_ptr.vmem [resolvable:$true] %s2335_s0  ;;  %s3666_s8 = int_to_ptr.vmem [resolvable:$true] %s2344_s8 }
  0x68   :  { %p3110_p13 = scmp.lt.s32.totalorder %s2336_s0, %s2336_s0 }
  0x69   :  { %2540 = vmatmul.mubr.msk.f32.vlgmr.msra.gmra.mrb[0].mxu0 %vm118_vm1, %v117_v9  ;;  %2551 = vmatmul.mubr.msk.f32.vlgmr.msra.gmra.mrb[0].mxu1 %vm118_vm1, %v2366_v47 }
  0x6a   :  { %2793 = vmatpush3.bf16.msra.mxu0 %v3335_v5  ;;  %2561 = vmatprep.mubr.msk.f32.mxu0 %vm3167_vm0, %v3168_v1 }
  0x6b   :  { %2794 = vmatprep.subr.bf16.mxu0 %v3166_v0  ;;  %2799 = vmatpush3.bf16.msra.mxu1 %v3335_v5 }
  0x6c   :  { %2572 = vmatprep.mubr.msk.f32.mxu1 %vm3167_vm0, %v3168_v1  ;;  %2800 = vmatprep.subr.bf16.mxu1 %v3166_v0 }
  0x6e   :  { %2796 = vmatpush3.bf16.msra.mxu0 %v3341_v7 }
  0x6f   :  { %2803 = vmatprep.subr.bf16.mxu0 %v3166_v0  ;;  %2802 = vmatpush3.bf16.msra.mxu1 %v3341_v7 }
  0x70   :  { %2809 = vmatprep.subr.bf16.mxu1 %v3166_v0 }
  0x71   :  { %2562 = vmatmul.mubr.msk.f32.vlgmr.msra.gmra.mrb[2].mxu0 %vm118_vm1, %v2368_v10 }
  0x72   :  { %2805 = vmatpush3.bf16.msra.mxu0 %v3335_v5  ;;  %2583 = vmatprep.mubr.msk.f32.mxu0 %vm3167_vm0, %v3168_v1 }
  0x73   :  { %2806 = vmatprep.subr.bf16.mxu0 %v3166_v0  ;;  %2573 = vmatmul.mubr.msk.f32.vlgmr.msra.gmra.mrb[2].mxu1 %vm118_vm1, %v2370_v48 }
  0x74   :  { %2811 = vmatpush3.bf16.msra.mxu1 %v3335_v5  ;;  %2594 = vmatprep.mubr.msk.f32.mxu1 %vm3167_vm0, %v3168_v1 }
  0x75   :  { %2812 = vmatprep.subr.bf16.mxu1 %v3166_v0 }
  0x76   :  { %2808 = vmatpush3.bf16.msra.mxu0 %v3341_v7 }
  0x77   :  { %2815 = vmatprep.subr.bf16.mxu0 %v3166_v0 }
  0x78   :  { %2814 = vmatpush3.bf16.msra.mxu1 %v3341_v7 }
  0x79   :  { %2584 = vmatmul.mubr.msk.f32.vlgmr.msra.gmra.mrb[4].mxu0 %vm118_vm1, %v2372_v11  ;;  %2821 = vmatprep.subr.bf16.mxu1 %v3166_v0 }
  0x7a   :  { %2817 = vmatpush3.bf16.msra.mxu0 %v3335_v5  ;;  %2605 = vmatprep.mubr.msk.f32.mxu0 %vm3167_vm0, %v3168_v1 }
  0x7b   :  { %2818 = vmatprep.subr.bf16.mxu0 %v3166_v0  ;;  %2595 = vmatmul.mubr.msk.f32.vlgmr.msra.gmra.mrb[4].mxu1 %vm118_vm1, %v2374_v50 }
  0x7c   :  { %2823 = vmatpush3.bf16.msra.mxu1 %v3335_v5  ;;  %2616 = vmatprep.mubr.msk.f32.mxu1 %vm3167_vm0, %v3168_v1 }
  0x7d   :  { %2824 = vmatprep.subr.bf16.mxu1 %v3166_v0 }
  0x7e   :  { %2820 = vmatpush3.bf16.msra.mxu0 %v3341_v7 }
  0x7f   :  { %2827 = vmatprep.subr.bf16.mxu0 %v3166_v0 }
  0x80   :  { %2826 = vmatpush3.bf16.msra.mxu1 %v3341_v7 }
  0x81   :  { %2606 = vmatmul.mubr.msk.f32.vlgmr.msra.gmra.mrb[6].mxu0 %vm118_vm1, %v2376_v14  ;;  %2833 = vmatprep.subr.bf16.mxu1 %v3166_v0 }
  0x82   :  { %2829 = vmatpush3.bf16.msra.mxu0 %v3389_v15  ;;  %2627 = vmatprep.mubr.msk.f32.mxu0 %vm3167_vm0, %v3168_v1 }
  0x83   :  { %2830 = vmatprep.subr.bf16.mxu0 %v3166_v0  ;;  %2617 = vmatmul.mubr.msk.f32.vlgmr.msra.gmra.mrb[6].mxu1 %vm118_vm1, %v2378_v51 }
  0x84   :  { %2835 = vmatpush3.bf16.msra.mxu1 %v3389_v15  ;;  %2638 = vmatprep.mubr.msk.f32.mxu1 %vm3167_vm0, %v3168_v1 }
  0x85   :  { %2836 = vmatprep.subr.bf16.mxu1 %v3166_v0 }
  0x86   :  { %2832 = vmatpush3.bf16.msra.mxu0 %v3400_v18 }
  0x87   :  { %2839 = vmatprep.subr.bf16.mxu0 %v3166_v0 }
  0x88   :  { %2838 = vmatpush3.bf16.msra.mxu1 %v3400_v18 }
  0x89   :  { %2628 = vmatmul.mubr.msk.f32.vlgmr.msra.gmra.mrb[8].mxu0 %vm118_vm1, %v743_v19  ;;  %2845 = vmatprep.subr.bf16.mxu1 %v3166_v0 }
  0x8a   :  { %2841 = vmatpush3.bf16.msra.mxu0 %v3389_v15  ;;  %2649 = vmatprep.mubr.msk.f32.mxu0 %vm3167_vm0, %v3168_v1 }
  0x8b   :  { %2842 = vmatprep.subr.bf16.mxu0 %v3166_v0 }
  0x8e   :  { %2844 = vmatpush3.bf16.msra.mxu0 %v3400_v18 }
  0x8f   :  { %2851 = vmatprep.subr.bf16.mxu0 %v3166_v0 }
  0xd3   :  { %v3427_v33 = vpop.permute.xlu0 %825 }
 0x13c   :  { %v188_v21 = vpop.f32.mrb[0].mxu0  ;;  %v265_v58 = vpop.f32.mrb[0].mxu1 }
 0x13d   :  { %v189_v22 = vadd.f32 %v3417_v20, %v188_v21  ;;  %v2541_v23 = vpop.f32.mrb[1].mxu0  ;;  %v266_v59 = vadd.f32 %v3417_v20, %v265_v58  ;;  %v2552_v60 = vpop.f32.mrb[1].mxu1 }
 0x13f   :  { %193 = vst.msk [vmem:[#allocation2] sm:$0x3] %vm192_vm2, %v189_v22  ;;  %270 = vst.msk [vmem:[#allocation2 + $0x2] sm:$0x3] %vm192_vm2, %v266_v59 }
 0x144   :  { %v342_v24 = vpop.f32.mrb[2].mxu0 }
 0x145   :  { %v343_v25 = vadd.f32 %v3417_v20, %v342_v24  ;;  %v2563_v26 = vpop.f32.mrb[3].mxu0 }
 0x146   :  { %v744_v37 = vld [vmem:[#allocation2] sm:$0x3]  ;;  %v419_v61 = vpop.f32.mrb[2].mxu1  ;;  %v857_v12 = vld [vmem:[#allocation2 + $0x2] sm:$0x3] }
 0x147   :  { %347 = vst.msk [vmem:[#allocation2 + $0x4] sm:$0x3] %vm192_vm2, %v343_v25  ;;  %v420_v62 = vadd.f32 %v3417_v20, %v419_v61  ;;  %v2574_v63 = vpop.f32.mrb[3].mxu1 }
 0x149   :  { %424 = vst.msk [vmem:[#allocation2 + $0x6] sm:$0x3] %vm192_vm2, %v420_v62 }
 0x14c   :  { %v496_v27 = vpop.f32.mrb[4].mxu0 }
 0x14d   :  { %v497_v28 = vadd.f32 %v3417_v20, %v496_v27  ;;  %v2585_v29 = vpop.f32.mrb[5].mxu0 }
 0x14e   :  { %v573_v2 = vpop.f32.mrb[4].mxu1 }
 0x14f   :  { %501 = vst.msk [vmem:[#allocation2 + $0x8] sm:$0x3] %vm192_vm2, %v497_v28  ;;  %v574_v3 = vadd.f32 %v3417_v20, %v573_v2  ;;  %v2596_v4 = vpop.f32.mrb[5].mxu1 }
 0x151   :  { %578 = vst.msk [vmem:[#allocation2 + $0xa] sm:$0x3] %vm192_vm2, %v574_v3 }
 0x154   :  { %v650_v30 = vpop.f32.mrb[6].mxu0 }
 0x155   :  { %v651_v31 = vadd.f32 %v3417_v20, %v650_v30  ;;  %v2607_v32 = vpop.f32.mrb[7].mxu0 }
 0x156   :  { %v727_v5 = vpop.f32.mrb[6].mxu1 }
 0x157   :  { %655 = vst.msk [vmem:[#allocation2 + $0xc] sm:$0x3] %vm192_vm2, %v651_v31  ;;  %v728_v6 = vadd.f32 %v3417_v20, %v727_v5  ;;  %v2618_v7 = vpop.f32.mrb[7].mxu1 }
 0x159   :  { %732 = vst.msk [vmem:[#allocation2 + $0xe] sm:$0x3] %vm192_vm2, %v728_v6 }
 0x15c   :  { %v814_v34 = vpop.f32.mrb[8].mxu0 }
 0x15d   :  { %v828_v35 = vadd.f32 %v3427_v33, %v814_v34  ;;  %v2629_v36 = vpop.f32.mrb[9].mxu0  ;;  %v818_v38 = vadd.f32 %v814_v34, %v744_v37 }
 0x15f   :  { %830 = vrot.lane.b32.xlu0 %v828_v35, %s3169_s9  ;;  %v2382_v39 = vmul.f32 -1.442695, %v818_v38  ;;  %v963_v35 = vld [vmem:[#allocation2 + $0x4] sm:$0x3] }
 0x161   :  { %2935 = vpow2.f32 %v2382_v39 }
 0x163   :  { %846 = vrot.lane.b32.xlu0 %v743_v19, %s3170_s1 }
 0x16b   :  { %v2936_v40 = vpop.eup %2935 }
 0x16c   :  { %v822_v41 = vadd.f32 1.0, %v2936_v40 }
 0x16e   :  { %2937 = vrcp.f32 %v822_v41 }
 0x178   :  { %v2938_v42 = vpop.eup %2937 }
 0x179   :  { %v840_v53 = vsub.f32 1.0, %v2938_v42 }
 0x1d1   :  { %v831_v43 = vpop.permute.xlu0 %830 }
 0x1d2   :  { %v833_v44 = vmul.f32 %v2938_v42, %v831_v43 }
 0x1d4   :  { %835 = vrot.lane.b32.xlu1 %v833_v44, %s3169_s9 }
 0x1d5   :  { %v847_v52 = vpop.permute.xlu0 %846 }
 0x1d6   :  { %v849_v55 = vmul.f32 %v2938_v42, %v847_v52 }
 0x246   :  { %v836_v45 = vpop.permute.xlu1 %835 }
 0x247   :  { %v838_v46 = vadd.f32 %v836_v45, %v744_v37 }
 0x249   :  { %2939 = vtanh.f32 %v838_v46 }
 0x253   :  { %v2940_v49 = vpop.eup %2939 }
 0x254   :  { %842 = vrot.lane.b32.xlu1 %v2940_v49, %s3171_s3 }
 0x2c6   :  { %v843_v54 = vpop.permute.xlu1 %842 }
 0x2c7   :  { %v845_v56 = vmul.f32 %v843_v54, %v840_v53 }
 0x2c9   :  { %v850_v57 = vadd.f32 %v849_v55, %v845_v56  ;;  %v1069_v55 = vld [vmem:[#allocation2 + $0x6] sm:$0x3] }
 0x2cb   :  { %852 = vrot.lane.b32.xlu1 %v850_v57, %s3171_s3 }
 0x33d   :  { %v853_v8 = vpop.permute.xlu1 %852 }
 0x33e   :  { %856 = vst.msk [vmem:[#allocation3] sm:$0x3] %vm855_vm3, %v853_v8  ;;  %2639 = vmatmul.mubr.msk.f32.vlgmr.msra.gmra.mrb[8].mxu1 %vm118_vm1, %v853_v8 }
 0x33f   :  { %2847 = vmatpush3.bf16.msra.mxu1 %v3389_v15  ;;  %2660 = vmatprep.mubr.msk.f32.mxu1 %vm3167_vm0, %v3168_v1 }
 0x340   :  { %2848 = vmatprep.subr.bf16.mxu1 %v3166_v0 }
 0x343   :  { %2850 = vmatpush3.bf16.msra.mxu1 %v3400_v18 }
 0x344   :  { %2857 = vmatprep.subr.bf16.mxu1 %v3166_v0 }
 0x411   :  { %v926_v9 = vpop.f32.mrb[8].mxu1 }
 0x412   :  { %v937_v10 = vadd.f32 %v926_v9, %v3427_v33  ;;  %v2640_v11 = vpop.f32.mrb[9].mxu1  ;;  %v930_v13 = vadd.f32 %v926_v9, %v857_v12 }
 0x414   :  { %939 = vrot.lane.b32.xlu0 %v937_v10, %s3169_s9  ;;  %v2384_v14 = vmul.f32 -1.442695, %v930_v13  ;;  %v1175_v13 = vld [vmem:[#allocation2 + $0x8] sm:$0x3] }
 0x416   :  { %2941 = vpow2.f32 %v2384_v14 }
 0x420   :  { %v2942_v16 = vpop.eup %2941 }
 0x421   :  { %v934_v17 = vadd.f32 1.0, %v2942_v16 }
 0x423   :  { %2943 = vrcp.f32 %v934_v17 }
 0x42d   :  { %v2944_v19 = vpop.eup %2943 }
 0x42e   :  { %v949_v25 = vsub.f32 1.0, %v2944_v19  ;;  %v955_v27 = vmul.f32 %v2944_v19, %v850_v57 }
 0x486   :  { %v940_v20 = vpop.permute.xlu0 %939 }
 0x487   :  { %v942_v21 = vmul.f32 %v2944_v19, %v940_v20 }
 0x489   :  { %944 = vrot.lane.b32.xlu1 %v942_v21, %s3169_s9 }
 0x4fb   :  { %v945_v22 = vpop.permute.xlu1 %944 }
 0x4fc   :  { %v947_v23 = vadd.f32 %v945_v22, %v857_v12 }
 0x4fe   :  { %2945 = vtanh.f32 %v947_v23 }
 0x508   :  { %v2946_v24 = vpop.eup %2945 }
 0x509   :  { %951 = vrot.lane.b32.xlu0 %v2946_v24, %s3171_s3 }
 0x57b   :  { %v952_v26 = vpop.permute.xlu0 %951 }
 0x57c   :  { %v954_v28 = vmul.f32 %v952_v26, %v949_v25 }
 0x57e   :  { %v956_v29 = vadd.f32 %v955_v27, %v954_v28 }
 0x580   :  { %958 = vrot.lane.b32.xlu1 %v956_v29, %s3171_s3 }
 0x5f2   :  { %v959_v30 = vpop.permute.xlu1 %958 }
 0x5f3   :  { %962 = vst.msk [vmem:[#allocation3 + $0x2] sm:$0x3] %vm855_vm3, %v959_v30  ;;  %2650 = vmatmul.mubr.msk.f32.vlgmr.msra.gmra.mrb[10].mxu0 %vm118_vm1, %v959_v30 }
 0x5f4   :  { %2853 = vmatpush3.bf16.msra.mxu0 %v3389_v15  ;;  %2671 = vmatprep.mubr.msk.f32.mxu0 %vm3167_vm0, %v3168_v1 }
 0x5f5   :  { %2854 = vmatprep.subr.bf16.mxu0 %v3166_v0 }
 0x5f8   :  { %2856 = vmatpush3.bf16.msra.mxu0 %v3400_v18 }
 0x5f9   :  { %2863 = vmatprep.subr.bf16.mxu0 %v3166_v0 }
 0x6c6   :  { %v1032_v31 = vpop.f32.mrb[10].mxu0 }
 0x6c7   :  { %v1043_v32 = vadd.f32 %v1032_v31, %v3427_v33  ;;  %v2651_v34 = vpop.f32.mrb[11].mxu0  ;;  %v1036_v36 = vadd.f32 %v1032_v31, %v963_v35 }
 0x6c9   :  { %1045 = vrot.lane.b32.xlu0 %v1043_v32, %s3169_s9  ;;  %v2386_v37 = vmul.f32 -1.442695, %v1036_v36  ;;  %v1281_v36 = vld [vmem:[#allocation2 + $0xa] sm:$0x3] }
 0x6cb   :  { %2947 = vpow2.f32 %v2386_v37 }
 0x6d5   :  { %v2948_v38 = vpop.eup %2947 }
 0x6d6   :  { %v1040_v39 = vadd.f32 1.0, %v2948_v38 }
 0x6d8   :  { %2949 = vrcp.f32 %v1040_v39 }
 0x6e2   :  { %v2950_v40 = vpop.eup %2949 }
 0x6e3   :  { %v1055_v46 = vsub.f32 1.0, %v2950_v40  ;;  %v1061_v48 = vmul.f32 %v2950_v40, %v956_v29 }
 0x73b   :  { %v1046_v41 = vpop.permute.xlu0 %1045 }
 0x73c   :  { %v1048_v42 = vmul.f32 %v2950_v40, %v1046_v41 }
 0x73e   :  { %1050 = vrot.lane.b32.xlu1 %v1048_v42, %s3169_s9 }
 0x7b0   :  { %v1051_v43 = vpop.permute.xlu1 %1050 }
 0x7b1   :  { %v1053_v44 = vadd.f32 %v1051_v43, %v963_v35 }
 0x7b3   :  { %2951 = vtanh.f32 %v1053_v44 }
 0x7bd   :  { %v2952_v45 = vpop.eup %2951 }
 0x7be   :  { %1057 = vrot.lane.b32.xlu0 %v2952_v45, %s3171_s3 }
 0x830   :  { %v1058_v47 = vpop.permute.xlu0 %1057 }
 0x831   :  { %v1060_v49 = vmul.f32 %v1058_v47, %v1055_v46 }
 0x833   :  { %v1062_v50 = vadd.f32 %v1061_v48, %v1060_v49 }
 0x835   :  { %1064 = vrot.lane.b32.xlu1 %v1062_v50, %s3171_s3 }
 0x8a7   :  { %v1065_v51 = vpop.permute.xlu1 %1064 }
 0x8a8   :  { %1068 = vst.msk [vmem:[#allocation3 + $0x4] sm:$0x3] %vm855_vm3, %v1065_v51  ;;  %2661 = vmatmul.mubr.msk.f32.vlgmr.msra.gmra.mrb[10].mxu1 %vm118_vm1, %v1065_v51 }
 0x8a9   :  { %2859 = vmatpush3.bf16.msra.mxu1 %v3389_v15  ;;  %2682 = vmatprep.mubr.msk.f32.mxu1 %vm3167_vm0, %v3168_v1 }
 0x8aa   :  { %2860 = vmatprep.subr.bf16.mxu1 %v3166_v0 }
 0x8ad   :  { %2862 = vmatpush3.bf16.msra.mxu1 %v3400_v18 }
 0x8ae   :  { %2869 = vmatprep.subr.bf16.mxu1 %v3166_v0 }
 0x97b   :  { %v1138_v52 = vpop.f32.mrb[10].mxu1 }
 0x97c   :  { %v1149_v53 = vadd.f32 %v1138_v52, %v3427_v33  ;;  %v2662_v54 = vpop.f32.mrb[11].mxu1  ;;  %v1142_v56 = vadd.f32 %v1138_v52, %v1069_v55 }
 0x97d   :  { %v1387_v54 = vld [vmem:[#allocation2 + $0xc] sm:$0x3] }
 0x97e   :  { %1151 = vrot.lane.b32.xlu0 %v1149_v53, %s3169_s9  ;;  %v2388_v57 = vmul.f32 -1.442695, %v1142_v56 }
 0x980   :  { %2953 = vpow2.f32 %v2388_v57 }
 0x98a   :  { %v2954_v58 = vpop.eup %2953 }
 0x98b   :  { %v1146_v59 = vadd.f32 1.0, %v2954_v58 }
 0x98d   :  { %2955 = vrcp.f32 %v1146_v59 }
 0x997   :  { %v2956_v60 = vpop.eup %2955 }
 0x998   :  { %v1161_v4 = vsub.f32 1.0, %v2956_v60  ;;  %v1167_v6 = vmul.f32 %v2956_v60, %v1062_v50 }
 0x9f0   :  { %v1152_v61 = vpop.permute.xlu0 %1151 }
 0x9f1   :  { %v1154_v62 = vmul.f32 %v2956_v60, %v1152_v61 }
 0x9f3   :  { %1156 = vrot.lane.b32.xlu1 %v1154_v62, %s3169_s9 }
 0xa65   :  { %v1157_v63 = vpop.permute.xlu1 %1156 }
 0xa66   :  { %v1159_v2 = vadd.f32 %v1157_v63, %v1069_v55 }
 0xa68   :  { %2957 = vtanh.f32 %v1159_v2 }
 0xa72   :  { %v2958_v3 = vpop.eup %2957 }
 0xa73   :  { %1163 = vrot.lane.b32.xlu0 %v2958_v3, %s3171_s3 }
 0xae5   :  { %v1164_v5 = vpop.permute.xlu0 %1163 }
 0xae6   :  { %v1166_v7 = vmul.f32 %v1164_v5, %v1161_v4 }
 0xae8   :  { %v1168_v8 = vadd.f32 %v1167_v6, %v1166_v7 }
 0xaea   :  { %1170 = vrot.lane.b32.xlu1 %v1168_v8, %s3171_s3 }
 0xb5c   :  { %v1171_v9 = vpop.permute.xlu1 %1170 }
 0xb5d   :  { %1174 = vst.msk [vmem:[#allocation3 + $0x6] sm:$0x3] %vm855_vm3, %v1171_v9  ;;  %2672 = vmatmul.mubr.msk.f32.vlgmr.msra.gmra.mrb[12].mxu0 %vm118_vm1, %v1171_v9 }
 0xb5e   :  { %2865 = vmatpush3.bf16.msra.mxu0 %v3389_v15  ;;  %2693 = vmatprep.mubr.msk.f32.mxu0 %vm3167_vm0, %v3168_v1 }
 0xb5f   :  { %2866 = vmatprep.subr.bf16.mxu0 %v3166_v0 }
 0xb62   :  { %2868 = vmatpush3.bf16.msra.mxu0 %v3400_v18 }
 0xc30   :  { %v1244_v10 = vpop.f32.mrb[12].mxu0 }
 0xc31   :  { %v1255_v11 = vadd.f32 %v1244_v10, %v3427_v33  ;;  %v2673_v12 = vpop.f32.mrb[13].mxu0  ;;  %v1248_v14 = vadd.f32 %v1244_v10, %v1175_v13 }
 0xc32   :  { %v1493_v12 = vld [vmem:[#allocation2 + $0xe] sm:$0x3] }
 0xc33   :  { %1257 = vrot.lane.b32.xlu0 %v1255_v11, %s3169_s9  ;;  %v2390_v16 = vmul.f32 -1.442695, %v1248_v14 }
 0xc35   :  { %2959 = vpow2.f32 %v2390_v16 }
 0xc3f   :  { %v2960_v17 = vpop.eup %2959 }
 0xc40   :  { %v1252_v19 = vadd.f32 1.0, %v2960_v17 }
 0xc42   :  { %2961 = vrcp.f32 %v1252_v19 }
 0xc4c   :  { %v2962_v20 = vpop.eup %2961 }
 0xc4d   :  { %v1267_v26 = vsub.f32 1.0, %v2962_v20  ;;  %v1273_v28 = vmul.f32 %v2962_v20, %v1168_v8 }
 0xca5   :  { %v1258_v21 = vpop.permute.xlu0 %1257 }
 0xca6   :  { %v1260_v22 = vmul.f32 %v2962_v20, %v1258_v21 }
 0xca8   :  { %1262 = vrot.lane.b32.xlu1 %v1260_v22, %s3169_s9 }
 0xd1a   :  { %v1263_v23 = vpop.permute.xlu1 %1262 }
 0xd1b   :  { %v1265_v24 = vadd.f32 %v1263_v23, %v1175_v13 }
 0xd1d   :  { %2963 = vtanh.f32 %v1265_v24 }
 0xd27   :  { %v2964_v25 = vpop.eup %2963 }
 0xd28   :  { %1269 = vrot.lane.b32.xlu0 %v2964_v25, %s3171_s3  ;;  %v1656_v25 = vld [vmem:[%s3713_s7 + $0x8] sm:$0xff] }
 0xd9a   :  { %v1270_v27 = vpop.permute.xlu0 %1269 }
 0xd9b   :  { %v1272_v29 = vmul.f32 %v1270_v27, %v1267_v26  ;;  %v1745_v26 = vld [vmem:[%s3708_s2] sm:$0xff] }
 0xd9d   :  { %v1274_v30 = vadd.f32 %v1273_v28, %v1272_v29  ;;  %v1746_v28 = vld [vmem:[%s3708_s2 + $0x8] sm:$0x3] }
 0xd9f   :  { %1276 = vrot.lane.b32.xlu1 %v1274_v30, %s3171_s3 }
 0xe11   :  { %v1277_v31 = vpop.permute.xlu1 %1276 }
 0xe12   :  { %1280 = vst.msk [vmem:[#allocation3 + $0x8] sm:$0x3] %vm855_vm3, %v1277_v31  ;;  %2683 = vmatmul.mubr.msk.f32.vlgmr.msra.gmra.mrb[12].mxu1 %vm118_vm1, %v1277_v31  ;;  %v3582_v31 = vpack.c.bf16 %v1746_v28, %v1745_v26  ;;  %v1652_v28 = vld [vmem:[#allocation10 + $0x8] sm:$0xff] }
 0xe13   :  { %2871 = vmatpush3.bf16.msra.mxu1 %v3389_v15  ;;  %2704 = vmatprep.mubr.msk.f32.mxu1 %vm3167_vm0, %v3168_v1 }
 0xe14   :  { %2872 = vmatprep.subr.bf16.mxu1 %v3166_v0 }
 0xe17   :  { %2874 = vmatpush3.bf16.msra.mxu1 %v3400_v18 }
 0xe18   :  { %2883 = vmatprep.subr.bf16.mxu1 %v3166_v0 }
 0xee5   :  { %v1350_v32 = vpop.f32.mrb[12].mxu1 }
 0xee6   :  { %v1361_v34 = vadd.f32 %v1350_v32, %v3427_v33  ;;  %v2684_v35 = vpop.f32.mrb[13].mxu1  ;;  %v1354_v37 = vadd.f32 %v1350_v32, %v1281_v36  ;;  %v1658_v32 = vld [vmem:[%s3713_s7 + $0x18] sm:$0xff] }
 0xee8   :  { %1363 = vrot.lane.b32.xlu0 %v1361_v34, %s3169_s9  ;;  %v2392_v38 = vmul.f32 -1.442695, %v1354_v37 }
 0xeea   :  { %2965 = vpow2.f32 %v2392_v38 }
 0xef4   :  { %v2966_v15 = vpop.eup %2965 }
 0xef5   :  { %v1358_v39 = vadd.f32 1.0, %v2966_v15 }
 0xef7   :  { %2967 = vrcp.f32 %v1358_v39  ;;  %v1601_v39 = vld [vmem:[#allocation3 + $0x2] sm:$0x3] }
 0xf01   :  { %v2968_v40 = vpop.eup %2967 }
 0xf02   :  { %v1373_v45 = vsub.f32 1.0, %v2968_v40  ;;  %v1379_v47 = vmul.f32 %v2968_v40, %v1274_v30  ;;  %v1657_v30 = vld [vmem:[%s3713_s7 + $0x10] sm:$0xff] }
 0xf03   :  { %v2879_v34 = vpack.c.bf16 %v1658_v32, %v1657_v30  ;;  %v1653_v30 = vld [vmem:[#allocation10 + $0x10] sm:$0xff] }
 0xf5a   :  { %v1364_v41 = vpop.permute.xlu0 %1363 }
 0xf5b   :  { %v1366_v42 = vmul.f32 %v2968_v40, %v1364_v41  ;;  %v1600_v40 = vld [vmem:[#allocation3] sm:$0x3]  ;;  %v1602_v41 = vld [vmem:[#allocation3 + $0x4] sm:$0x3] }
 0xf5d   :  { %1368 = vrot.lane.b32.xlu1 %v1366_v42, %s3169_s9 }
 0xfcf   :  { %v1369_v18 = vpop.permute.xlu1 %1368 }
 0xfd0   :  { %v1371_v43 = vadd.f32 %v1369_v18, %v1281_v36  ;;  %v1603_v18 = vld [vmem:[#allocation3 + $0x6] sm:$0x3] }
 0xfd2   :  { %2969 = vtanh.f32 %v1371_v43  ;;  %v1616_v43 = vrot.slane %v1601_v39, 7 }
 0xfdc   :  { %v2970_v44 = vpop.eup %2969 }
 0xfdd   :  { %1375 = vrot.lane.b32.xlu0 %v2970_v44, %s3171_s3  ;;  %v1604_v44 = vld [vmem:[#allocation3 + $0x8] sm:$0x3] }
0x104f   :  { %v1376_v46 = vpop.permute.xlu0 %1375 }
0x1050   :  { %v1378_v48 = vmul.f32 %v1376_v46, %v1373_v45  ;;  %v1619_v45 = vrot.slane %v1602_v41, 6  ;;  %v1637_v46 = vrot.slane %v1600_v40, 1 }
0x1052   :  { %v1380_v49 = vadd.f32 %v1379_v47, %v1378_v48  ;;  %v1639_v48 = vrot.slane %v1602_v41, 7 }
0x1054   :  { %1382 = vrot.lane.b32.xlu1 %v1380_v49, %s3171_s3 }
0x10c6   :  { %v1383_v50 = vpop.permute.xlu1 %1382 }
0x10c7   :  { %1386 = vst.msk [vmem:[#allocation3 + $0xa] sm:$0x3] %vm855_vm3, %v1383_v50  ;;  %2694 = vmatmul.mubr.msk.f32.vlgmr.msra.gmra.mrb[14].mxu0 %vm118_vm1, %v1383_v50  ;;  %v1622_v50 = vrot.slane %v1603_v18, 5 }
0x10ce   :  { %v1605_v47 = vld [vmem:[#allocation3 + $0xa] sm:$0x3] }
0x119a   :  { %v1456_v51 = vpop.f32.mrb[14].mxu0 }
0x119b   :  { %v1467_v52 = vadd.f32 %v1456_v51, %v3427_v33  ;;  %v2695_v53 = vpop.f32.mrb[15].mxu0  ;;  %v1460_v55 = vadd.f32 %v1456_v51, %v1387_v54  ;;  %v1641_v51 = vrot.slane %v1603_v18, 6 }
0x119c   :  { %v1618_v53 = vsel %vm1617_vm5, %v1616_v43, %v1600_v40 }
0x119d   :  { %1469 = vrot.lane.b32.xlu0 %v1467_v52, %s3169_s9  ;;  %v2394_v56 = vmul.f32 -1.442695, %v1460_v55  ;;  %v1638_v52 = vsel %vm1617_vm5, %v1601_v39, %v1637_v46  ;;  %v1643_v55 = vrot.slane %v1604_v44, 5 }
0x119f   :  { %2971 = vpow2.f32 %v2394_v56  ;;  %v1621_v56 = vsel %vm1620_vm6, %v1619_v45, %v1618_v53 }
0x11a9   :  { %v2972_v57 = vpop.eup %2971 }
0x11aa   :  { %v1464_v58 = vadd.f32 1.0, %v2972_v57  ;;  %v1628_v57 = vrot.slane %v1605_v47, 3 }
0x11ac   :  { %2973 = vrcp.f32 %v1464_v58  ;;  %v1645_v58 = vrot.slane %v1605_v47, 4 }
0x11b6   :  { %v2974_v59 = vpop.eup %2973 }
0x11b7   :  { %v1479_v3 = vsub.f32 1.0, %v2974_v59  ;;  %v1485_v5 = vmul.f32 %v2974_v59, %v1380_v49 }
0x120f   :  { %v1470_v60 = vpop.permute.xlu0 %1469 }
0x1210   :  { %v1472_v61 = vmul.f32 %v2974_v59, %v1470_v60 }
0x1212   :  { %1474 = vrot.lane.b32.xlu1 %v1472_v61, %s3169_s9  ;;  %v1640_v61 = vsel %vm1620_vm6, %v1639_v48, %v1638_v52 }
0x1284   :  { %v1475_v62 = vpop.permute.xlu1 %1474 }
0x1285   :  { %v1477_v63 = vadd.f32 %v1475_v62, %v1387_v54  ;;  %v1625_v54 = vrot.slane %v1604_v44, 4  ;;  %v1624_v62 = vsel %vm1623_vm7, %v1622_v50, %v1621_v56 }
0x1287   :  { %2975 = vtanh.f32 %v1477_v63  ;;  %v1642_v63 = vsel %vm1623_vm7, %v1641_v51, %v1640_v61  ;;  %v2235_v61 = vld [vmem:[%s3716_s10 + $0x18] sm:$0xff] }
0x1291   :  { %v2976_v2 = vpop.eup %2975 }
0x1292   :  { %1481 = vrot.lane.b32.xlu0 %v2976_v2, %s3171_s3 }
0x1304   :  { %v1482_v4 = vpop.permute.xlu0 %1481 }
0x1305   :  { %v1484_v6 = vmul.f32 %v1482_v4, %v1479_v3  ;;  %v1627_v3 = vsel %vm1626_vm8, %v1625_v54, %v1624_v62  ;;  %v1644_v4 = vsel %vm1626_vm8, %v1643_v55, %v1642_v63 }
0x1307   :  { %v1486_v7 = vadd.f32 %v1485_v5, %v1484_v6  ;;  %v1630_v5 = vsel %vm1629_vm9, %v1628_v57, %v1627_v3  ;;  %v2232_v57 = vld [vmem:[%s3716_s10] sm:$0xff] }
0x1309   :  { %1488 = vrot.lane.b32.xlu1 %v1486_v7, %s3171_s3 }
0x137b   :  { %v1489_v8 = vpop.permute.xlu1 %1488 }
0x137c   :  { %1492 = vst.msk [vmem:[#allocation3 + $0xc] sm:$0x3] %vm855_vm3, %v1489_v8  ;;  %2705 = vmatmul.mubr.msk.f32.vlgmr.msra.gmra.mrb[14].mxu1 %vm118_vm1, %v1489_v8  ;;  %v1646_v8 = vsel %vm1629_vm9, %v1645_v58, %v1644_v4  ;;  %v2233_v58 = vld [vmem:[%s3716_s10 + $0x8] sm:$0xff] }
0x137d   :  { %2722 = vmatprep.mubr.msk.f32.mxu1 %vm3167_vm0, %v3168_v1  ;;  %2886 = vmatpush3.bf16.xpose.msk.msra.mxu1 %vm3575_vm4, %v3582_v31 }
0x137e   :  { %2891 = vmatprep.subr.bf16.mxu1 %v3166_v0 }
0x1383   :  { %v1606_v49 = vld [vmem:[#allocation3 + $0xc] sm:$0x3] }
0x1384   :  { %v1631_v59 = vrot.slane %v1606_v49, 2  ;;  %v1647_v60 = vrot.slane %v1606_v49, 3 }
0x144f   :  { %v1562_v9 = vpop.f32.mrb[14].mxu1 }
0x1450   :  { %v1573_v10 = vadd.f32 %v1562_v9, %v3427_v33  ;;  %v2706_v11 = vpop.f32.mrb[15].mxu1  ;;  %v1566_v13 = vadd.f32 %v1562_v9, %v1493_v12  ;;  %v1655_v33 = vld [vmem:[%s3713_s7] sm:$0xff]  ;;  %v1633_v9 = vsel %vm1632_vm10, %v1631_v59, %v1630_v5  ;;  %v2911_v59 = vpack.c.bf16 %v2233_v58, %v2232_v57 }
0x1451   :  { %v2875_v27 = vpack.c.bf16 %v1656_v25, %v1655_v33 }
0x1452   :  { %1575 = vrot.lane.b32.xlu0 %v1573_v10, %s3169_s9  ;;  %v2396_v14 = vmul.f32 -1.442695, %v1566_v13  ;;  %v1648_v10 = vsel %vm1632_vm10, %v1647_v60, %v1646_v8  ;;  %v3604_v13 = vld [vmem:[#allocation11] ss:$0 sm:$0xff] }
0x1453   :  { %2876 = vmatprep.subr.bf16.mxu0 %v2875_v27  ;;  %v2234_v60 = vld [vmem:[%s3716_s10 + $0x10] sm:$0xff]  ;;  %s3105_s10 = scalar_lea.vmem %s2336_s0, 32 }
0x1454   :  { %2977 = vpow2.f32 %v2396_v14  ;;  %2878 = vmatpush3.bf16.msra.mxu0 %v2875_v27  ;;  %v1651_v27 = vld [vmem:[#allocation10] sm:$0xff]  ;;  %v2915_v62 = vpack.c.bf16 %v2235_v61, %v2234_v60  ;;  %p3106_p12 = scmp.ne.s32.totalorder %s2336_s0, %s3105_s10  ;;  %p3111_p0 = scmp.lt.s32.totalorder %s3105_s10, %s3105_s10 }
0x1455   :  { %2880 = vmatprep.subr.bf16.mxu0 %v2879_v34  ;;  %v2892_v32 = vpack.c.bf16 %v1652_v28, %v1651_v27 }
0x1456   :  { %p3112_p1 = por %p3111_p0, %p3110_p13 }
0x1458   :  { %2882 = vmatpush3.bf16.msra.mxu0 %v2879_v34  ;;  %v1654_v34 = vld [vmem:[#allocation10 + $0x18] sm:$0xff]  ;;  %p3113_p2 = pnand %p3112_p1, %p3106_p12 }
0x1459   :  { %2887 = vmatprep.subr.bf16.mxu0 %v3166_v0 }
0x145e   :  { %v2978_v16 = vpop.eup %2977 }
0x145f   :  { %v1570_v17 = vadd.f32 1.0, %v2978_v16 }
0x1461   :  { %2979 = vrcp.f32 %v1570_v17 }
0x146b   :  { %v2980_v19 = vpop.eup %2979 }
0x146c   :  { %v1585_v35 = vsub.f32 1.0, %v2980_v19  ;;  %v1591_v37 = vmul.f32 %v2980_v19, %v1486_v7 }
0x14c4   :  { %v1576_v20 = vpop.permute.xlu0 %1575 }
0x14c5   :  { %v1578_v21 = vmul.f32 %v2980_v19, %v1576_v20 }
0x14c7   :  { %1580 = vrot.lane.b32.xlu1 %v1578_v21, %s3169_s9 }
0x1539   :  { %v1581_v22 = vpop.permute.xlu1 %1580 }
0x153a   :  { %v1583_v23 = vadd.f32 %v1581_v22, %v1493_v12 }
0x153c   :  { %2981 = vtanh.f32 %v1583_v23 }
0x1546   :  { %v2982_v24 = vpop.eup %2981 }
0x1547   :  { %1587 = vrot.lane.b32.xlu0 %v2982_v24, %s3171_s3 }
0x15b9   :  { %v1588_v36 = vpop.permute.xlu0 %1587 }
0x15ba   :  { %v1590_v38 = vmul.f32 %v1588_v36, %v1585_v35  ;;  %v2895_v35 = vpack.c.bf16 %v1654_v34, %v1653_v30 }
0x15bc   :  { %v1592_v15 = vadd.f32 %v1591_v37, %v1590_v38  ;;  %v2407_v37 = vld [vmem:[%s3708_s2 + $0x18] sm:$0x3] }
0x15be   :  { %1594 = vrot.lane.b32.xlu1 %v1592_v15, %s3171_s3 }
0x1630   :  { %v1595_v42 = vpop.permute.xlu1 %1594 }
0x1631   :  { %1598 = vst.msk [vmem:[#allocation3 + $0xe] sm:$0x3] %vm855_vm3, %v1595_v42  ;;  %1599 = vst.msk [vmem:[#allocation14] sm:$0x3] %vm855_vm3, %v1595_v42 }
0x1638   :  { %v1607_v2 = vld [vmem:[#allocation3 + $0xe] sm:$0x3] }
0x1639   :  { %v1634_v6 = vrot.slane %v1607_v2, 1  ;;  %v1649_v7 = vrot.slane %v1607_v2, 2 }
0x163b   :  { %v1636_v11 = vsel %vm1635_vm11, %v1634_v6, %v1633_v9  ;;  %v1650_v12 = vsel %vm1635_vm11, %v1649_v7, %v1648_v10 }
0x163c   :  { %2715 = vmatprep.mubr.msk.f32.mxu0 %vm118_vm1, %v1636_v11  ;;  %2723 = vmatmul.mubr.msk.f32.vlgmr.msra.gmra.mrb[16].mxu1 %vm118_vm1, %v1636_v11 }
0x163d   :  { %2716 = vmatmul.mubr.msk.f32.vlgmr.msra.gmra.mrb[16].mxu0 %vm118_vm1, %v1650_v12  ;;  %2740 = vmatprep.mubr.msk.f32.mxu1 %vm3167_vm0, %v3168_v1 }
0x163e   :  { %2729 = vmatprep.mubr.msk.f32.mxu0 %vm3167_vm0, %v3168_v1  ;;  %2890 = vmatpush3.bf16.msk.msra.mxu0 %vm3611_vm15, %v3582_v31  ;;  %v2406_v31 = vld [vmem:[%s3708_s2 + $0x10] sm:$0xff] }
0x163f   :  { %2897 = vmatprep.subr.bf16.mxu0 %v3166_v0  ;;  %2893 = vmatpush3.bf16.msra.mxu1 %v2892_v32  ;;  %v2898_v15 = vpack.c.bf16 %v2407_v37, %v2406_v31 }
0x1640   :  { %2894 = vmatprep.subr.bf16.mxu1 %v3166_v0 }
0x1643   :  { %2896 = vmatpush3.bf16.msra.mxu1 %v2895_v35 }
0x1644   :  { %2901 = vmatprep.subr.bf16.mxu1 %v3166_v0 }
0x170f   :  { %v1819_v14 = vpop.f32.mrb[16].mxu1 }
0x1710   :  { %v2717_v16 = vpop.f32.mrb[16].mxu0  ;;  %v2724_v17 = vpop.f32.mrb[17].mxu1  ;;  %v1824_v19 = vsel %vm1823_vm12, %v1819_v14, -inf }
0x1711   :  { %v3608_v20 = vadd.f32 %v2717_v16, %v3604_v13  ;;  %1825 = vmax.xlane.f32.xlu0 %v1824_v19  ;;  %v1736_v21 = vpop.f32.mrb[17].mxu0 }
0x1712   :  { %v1737_v47 = vadd.f32 %v3604_v13, %v1736_v21 }
0x179e   :  { %v1826_v22 = vpop.xlane.xlu0 %1825 }
0x179f   :  { %v1827_v23 = vsub.f32 %v1819_v14, %v1826_v22 }
0x17a1   :  { %v1828_v24 = vmul.f32 1.442695, %v1827_v23 }
0x17a3   :  { %2983 = vpow2.f32 %v1828_v24 }
0x17ad   :  { %v2984_v33 = vpop.eup %2983 }
0x17ae   :  { %v1830_v25 = vsel %vm1823_vm12, %v2984_v33, 0.0 }
0x17af   :  { %1831 = vadd.xlane.f32.xlu1 %v1830_v25 }
0x183c   :  { %v1832_v36 = vpop.xlane.xlu1 %1831 }
0x183d   :  { %2985 = vrcp.f32 %v1832_v36 }
0x1847   :  { %v2986_v38 = vpop.eup %2985 }
0x1848   :  { %v1834_v39 = vmul.f32 %v2986_v38, %v2984_v33 }
0x184a   :  { %1835 = vst.msk [vmem:[#allocation15] sm:$0xff] %vm1823_vm12, %v1834_v39  ;;  %2730 = vmatmul.mubr.msk.f32.vlgmr.msra.gmra.mrb[18].mxu0 %vm1823_vm12, %v1834_v39 }
0x184b   :  { %2900 = vmatpush3.bf16.xpose.msk.msra.mxu0 %vm3575_vm4, %v2898_v15  ;;  %2747 = vmatprep.mubr.msk.f32.mxu0 %vm3167_vm0, %v3168_v1 }
0x184c   :  { %2905 = vmatprep.subr.bf16.mxu0 %v3166_v0 }
0x1852   :  { %2748 = vmatmul.mubr.msk.f32.vlgmr.msra.gmra.mrb[20].mxu0 %vm118_vm1, %v1650_v12 }
0x1853   :  { %2907 = vmatpush3.bf16.msra.mxu0 %v2892_v32  ;;  %2765 = vmatprep.mubr.msk.f32.mxu0 %vm3167_vm0, %v3168_v1 }
0x1854   :  { %2908 = vmatprep.subr.bf16.mxu0 %v3166_v0 }
0x1857   :  { %2910 = vmatpush3.bf16.msra.mxu0 %v2895_v35 }
0x191d   :  { %v1908_v40 = vpop.f32.mrb[18].mxu0 }
0x191e   :  { %v2731_v41 = vpop.f32.mrb[19].mxu0  ;;  %2741 = vmatmul.mubr.msk.f32.vlgmr.msra.gmra.mrb[18].mxu1 %vm118_vm1, %v1908_v40 }
0x191f   :  { %2904 = vmatpush3.bf16.msk.msra.mxu1 %vm3611_vm15, %v2898_v15  ;;  %2754 = vmatprep.mubr.msk.f32.mxu1 %vm3167_vm0, %v3168_v1 }
0x1920   :  { %2912 = vmatprep.subr.bf16.mxu1 %v2911_v59 }
0x1925   :  { %v2063_v29 = vpop.f32.mrb[20].mxu0 }
0x1926   :  { %v2749_v42 = vpop.f32.mrb[21].mxu0  ;;  %v2067_v18 = vsel %vm1823_vm12, %v2063_v29, -inf }
0x1927   :  { %2068 = vmax.xlane.f32.xlu0 %v2067_v18 }
0x19b4   :  { %v2069_v43 = vpop.xlane.xlu0 %2068 }
0x19b5   :  { %v2070_v44 = vsub.f32 %v2063_v29, %v2069_v43 }
0x19b7   :  { %v2071_v45 = vmul.f32 1.442695, %v2070_v44 }
0x19b9   :  { %2987 = vpow2.f32 %v2071_v45 }
0x19c3   :  { %v2988_v0 = vpop.eup %2987 }
0x19c4   :  { %v2073_v46 = vsel %vm1823_vm12, %v2988_v0, 0.0 }
0x19c5   :  { %2074 = vadd.xlane.f32.xlu0 %v2073_v46 }
0x19f1   :  { %v1981_v48 = vpop.f32.mrb[18].mxu1 }
0x19f2   :  { %v1985_v49 = vadd.f32 %v1981_v48, %v1737_v47  ;;  %v2742_v50 = vpop.f32.mrb[19].mxu1 }
0x19f4   :  { %2989 = vtanh.f32 %v1985_v49 }
0x19fe   :  { %v2990_v1 = vpop.eup %2989 }
0x19ff   :  { %1987 = vst.msk [vmem:[#allocation4] sm:$0xff] %vm118_vm1, %v2990_v1 }
0x1a06   :  { %v2230_v54 = vld [vmem:[#allocation4] sm:$0xff] }
0x1a52   :  { %v2075_v51 = vpop.xlane.xlu0 %2074 }
0x1a53   :  { %2991 = vrcp.f32 %v2075_v51 }
0x1a5d   :  { %v2992_v52 = vpop.eup %2991 }
0x1a5e   :  { %v2077_v53 = vmul.f32 %v2992_v52, %v2988_v0 }
0x1a60   :  { %2078 = vst.msk [vmem:[#allocation15 + $0x8] sm:$0xff] %vm1823_vm12, %v2077_v53  ;;  %2755 = vmatmul.mubr.msk.f32.vlgmr.msra.gmra.mrb[20].mxu1 %vm1823_vm12, %v2077_v53 }
0x1a61   :  { %2776 = vmatprep.mubr.msk.f32.mxu1 %vm118_vm1, %v2230_v54  ;;  %2914 = vmatpush3.bf16.msra.mxu1 %v2911_v59 }
0x1a62   :  { %2916 = vmatprep.subr.bf16.mxu1 %v2915_v62 }
0x1a65   :  { %2918 = vmatpush3.bf16.msra.mxu1 %v2915_v62 }
0x1b33   :  { %v2150_v55 = vpop.f32.mrb[20].mxu1 }
0x1b34   :  { %v2756_v56 = vpop.f32.mrb[21].mxu1  ;;  %2766 = vmatmul.mubr.msk.f32.vlgmr.msra.gmra.mrb[22].mxu0 %vm118_vm1, %v2150_v55 }
0x1c07   :  { %v2223_v63 = vpop.f32.mrb[22].mxu0 }
0x1c08   :  { %v2227_v2 = vadd.f32 %v2223_v63, %v3608_v20  ;;  %v2767_v3 = vpop.f32.mrb[23].mxu0 }
0x1c0a   :  { %2993 = vtanh.f32 %v2227_v2 }
0x1c14   :  { %v2994_v4 = vpop.eup %2993 }
0x1c15   :  { %2229 = vst.msk [vmem:[#allocation4 + $0x8] sm:$0xff] %vm118_vm1, %v2994_v4 }
0x1c1c   :  { %v2231_v5 = vld [vmem:[#allocation4 + $0x8] sm:$0xff] }
0x1c1d   :  { %2777 = vmatmul.mubr.msk.f32.vlgmr.msra.gmra.mrb[22].mxu1 %vm118_vm1, %v2231_v5 }
0x1c1e   :  { %3116 = shalt.err (!%p3113_p2)
}
0x1c1f   :  { %s3117_s11 = scalar_lea.hbm %s3719_s13, 32 }
0x1c20   :  { %p3118_p3 = scmp.ne.s32.totalorder %s3719_s13, %s3117_s11  ;;  %p3121_p4 = scmp.lt.u32.totalorder %s3117_s11, %s3719_s13 }
0x1c22   :  { %p3123_p5 = pnand %p3121_p4, %p3118_p3 }
0x1c24   :  { %3126 = shalt.err (!%p3123_p5)
}
0x1c25   :  { %2338 = dma.vmem_to_hbm [thread:$0]  %s2336_s0, 32, %s3719_s13, [#allocation7]  }
0x1c26   :  { %s3127_s7 = scalar_lea.vmem %s3666_s8, 256  ;;  %p3132_p7 = scmp.lt.s32.totalorder %s3666_s8, %s3666_s8 }
0x1c27   :  { %p3128_p6 = scmp.ne.s32.totalorder %s3666_s8, %s3127_s7  ;;  %p3133_p8 = scmp.lt.s32.totalorder %s3127_s7, %s3127_s7 }
0x1c29   :  { %p3134_p9 = por %p3133_p8, %p3132_p7 }
0x1c2b   :  { %p3135_p10 = pnand %p3134_p9, %p3128_p6 }
0x1c2d   :  { %3138 = shalt.err (!%p3135_p10)
}
0x1c2e   :  { %s3139_s4 = scalar_lea.hbm %s3720_s14, 256 }
0x1c2f   :  { %p3140_p11 = scmp.ne.s32.totalorder %s3720_s14, %s3139_s4  ;;  %p3143_p12 = scmp.lt.u32.totalorder %s3139_s4, %s3720_s14 }
0x1c31   :  { %p3145_p13 = pnand %p3143_p12, %p3140_p11 }
0x1c33   :  { %3148 = shalt.err (!%p3145_p13)
}
0x1c34   :  { %2350 = dma.vmem_to_hbm [thread:$0]  %s3666_s8, 256, %s3720_s14, [#allocation16], %s3163_s5, %s3163_s5, %s3164_s24   ;;  %v2414_v6 = vld [vmem:[#allocation13] ss:$0 sm:$0xff]  ;;  %vm2324_vm0 = vcmask 130048  }
0x1cf0   :  { %v2778_v7 = vpop.f32.mrb[22].mxu1 }
0x1cf1   :  { %v2321_v8 = vadd.f32 %v2778_v7, %v2414_v6  ;;  %v2315_v9 = vpop.f32.mrb[23].mxu1 }
0x1cf2   :  { %v2316_v10 = vadd.f32 %v2414_v6, %v2315_v9 }
0x1cf3   :  { %2326 = vst.msk [vmem:[%s3718_s12 + $0x8] sm:$0xff] %vm2324_vm0, %v2321_v8 }
0x1cf4   :  { %2325 = vst.msk [vmem:[%s3718_s12] sm:$0xff] %vm2324_vm0, %v2316_v10 }
0x1cf5   :  { %3155 = dma.done.wait [#allocation7], 32  }
0x1cf6   :  { %3156 = vsyncadd [#allocation7], 4294967264 }
0x1cf7   :  { %3157 = dma.done.wait [#allocation16], 256  }
0x1cf8   :  { %3158 = vsyncadd [#allocation16], 4294967040 }
0x1cf9   :  { %2359 = vsyncpa [#allocation6], 1 }
0x1cfa   :  { %2360 = vsyncpa [#allocation9], 1 }
0x1cfb   :  { %2361 = vsyncpa [#allocation12], 1 }
0x1cfc   :  { %2362 = vsyncpa [#allocation7], 1 }
0x1cfd   :  { %2363 = vsyncpa [#allocation16], 1 }

</bundles_post_ra>
